<compile_context>
chip_gen: v7x
topology: tpu7x:2x2x1
jax: 0.10.0
libtpu: 0.0.40
codegen_flags: <defaults>
</compile_context>

<pallas_src>
import functools
import math

import jax
import jax.numpy as jnp
from jax import lax
from jax.experimental import pallas as pl
from jax.experimental.pallas import tpu as pltpu

# --- small deterministic config (d_model=32 -> d_inner=64, dt_rank=2, d_state=16) ---
D_MODEL = 32
N_LAYER = 2
D_STATE = 16
EXPAND = 2
D_CONV = 4
D_INNER = EXPAND * D_MODEL
DT_RANK = math.ceil(D_MODEL / 16)
DN = D_INNER * D_STATE          # flattened (lane-dense) SSM state width = 1024
EPS = 1e-5


def mamba_stack_kernel(x_ref, rmsw_ref, winx_ref, winr_ref, convw_ref, convb_ref,
                       wdelta_ref, bdt_ref, wb_ref, wc_ref, aflat_ref,
                       dvec_ref, wout_ref, emat_ref, reduce_ref,
                       out_ref, *, batch):
    """One grid step == one ResidualBlock applied to the whole (L*B, D) token slab.

    Rows are time-major: r = t * batch + b.  The residual stream lives in out_ref,
    which stays VMEM-resident across the (sequential) layer grid axis.
    """
    layer = pl.program_id(0)
    lb, _ = out_ref.shape
    d_inner = winx_ref.shape[2]
    d_conv = convw_ref.shape[1]
    dn = aflat_ref.shape[2]
    d_state = wb_ref.shape[2]
    seq_len = lb // batch

    # Initialize the resident residual stream from the input on the first layer only.
    @pl.when(layer == 0)
    def _():
        out_ref[...] = x_ref[...]

    h = out_ref[...]                                                       # (lb, d_model) f32

    # --- RMSNorm (f32 vector math) ---
    ms = jnp.mean(h * h, axis=-1, keepdims=True)
    hn = h * lax.rsqrt(ms + EPS) * rmsw_ref[0]
    hn16 = hn.astype(jnp.bfloat16)

    # --- in_proj, split host-side into conv branch / gate branch (bf16 MXU, f32 acc) ---
    xc = jnp.dot(hn16, winx_ref[0], preferred_element_type=jnp.float32)    # (lb, d_inner)
    res = jnp.dot(hn16, winr_ref[0], preferred_element_type=jnp.float32)   # (lb, d_inner)

    # --- depthwise causal conv1d: pure register accumulation of shifted copies ---
    convw = convw_ref[0]                                                   # (d_conv, d_inner) f32
    acc = jnp.broadcast_to(convb_ref[0], (lb, d_inner))
    for k in range(d_conv):
        s = d_conv - 1 - k                                                 # causal shift of tap k
        tap = convw[k:k + 1, :]
        if s == 0:
            shifted = xc
        else:
            shifted = jnp.concatenate(
                [jnp.zeros((s * batch, d_inner), xc.dtype), xc[: lb - s * batch, :]],
                axis=0)
        acc = acc + shifted * tap
    u = jax.nn.silu(acc)                                                   # (lb, d_inner) f32
    u16 = u.astype(jnp.bfloat16)

    # --- fused x_proj/dt_proj + raw (d_inner, d_state) B/C projections (all MXU) ---
    delta = jax.nn.softplus(
        jnp.dot(u16, wdelta_ref[0], preferred_element_type=jnp.float32) + bdt_ref[0])
    b_small = jnp.dot(u16, wb_ref[0], preferred_element_type=jnp.float32)  # (lb, d_state)
    c_small = jnp.dot(u16, wc_ref[0], preferred_element_type=jnp.float32)  # (lb, d_state)

    # Expand b/c to the lane-dense flattened layout j = n*d_inner + d via the small
    # shared 0/1 matrix (exact, f32); delta expansion is a pure lane tile.
    b_rep = jnp.dot(b_small, emat_ref[...], preferred_element_type=jnp.float32)   # (lb, dn)
    c_rep = jnp.dot(c_small, emat_ref[...], preferred_element_type=jnp.float32)   # (lb, dn)
    dA = jnp.exp(jnp.tile(delta, (1, d_state)) * aflat_ref[0])                    # (lb, dn)
    dBu = jnp.tile(delta * u, (1, d_state)) * b_rep                               # (lb, dn)

    # --- selective scan: fully unrolled; per-step states stay in registers ---
    state = jnp.zeros((batch, dn), jnp.float32)
    state_rows = []
    for t in range(seq_len):
        r0 = t * batch
        state = dA[r0:r0 + batch, :] * state + dBu[r0:r0 + batch, :]
        state_rows.append(state)
    states = jnp.concatenate(state_rows, axis=0)                           # (lb, dn)

    # y[r, d] = sum_n states[r, n*d_inner + d] * C[r, n]  -> one MXU matmul (K=dn).
    y = jnp.dot(states * c_rep, reduce_ref[...], preferred_element_type=jnp.float32)
    y = y + u * dvec_ref[0]
    y = y * jax.nn.silu(res)

    out = jnp.dot(y.astype(jnp.bfloat16), wout_ref[0],
                  preferred_element_type=jnp.float32)                      # (lb, d_model)
    out_ref[...] = h + out


_WEIGHT_ORDER = ('rms_w', 'w_in_x', 'w_in_res', 'conv_w', 'conv_b', 'w_delta',
                 'b_dt', 'w_b', 'w_c', 'a_flat', 'd_vec', 'w_out')
_BF16_WEIGHTS = {'w_in_x', 'w_in_res', 'w_delta', 'w_b', 'w_c', 'w_out'}


def prepare_weights(layer_params):
    """Host-side weight prep: fuse dt_proj into x_proj, fold A = -exp(A_log) into the
    flattened layout, cast matmul weights to bf16, and stack all layers."""
    # E[n, n*d_inner + d] = 1 : expands a (.., d_state) row to the flattened layout.
    e_mat = jnp.repeat(jnp.eye(D_STATE, dtype=jnp.float32), D_INNER, axis=1)     # (16, DN)
    # R[n*d_inner + d, d] = 1 : sums the flattened layout back over n -> (.., d_inner).
    reduce_mat = jnp.tile(jnp.eye(D_INNER, dtype=jnp.float32), (1, D_STATE)).T   # (DN, 64)

    per_layer = {k: [] for k in _WEIGHT_ORDER}
    for p in layer_params:
        w_x = p['w_x']
        per_layer['rms_w'].append(p['rms_w'])                                  # (1, d_model)
        per_layer['w_in_x'].append(p['w_in'][:, :D_INNER])                     # (d_model, d_inner)
        per_layer['w_in_res'].append(p['w_in'][:, D_INNER:])                   # (d_model, d_inner)
        per_layer['conv_w'].append(p['conv_w'])                                # (d_conv, d_inner)
        per_layer['conv_b'].append(p['conv_b'])                                # (1, d_inner)
        per_layer['w_delta'].append(w_x[:, :DT_RANK] @ p['w_dt'])              # fused dt_proj
        per_layer['b_dt'].append(p['b_dt'])                                    # (1, d_inner)
        per_layer['w_b'].append(w_x[:, DT_RANK:DT_RANK + D_STATE])             # (d_inner, d_state)
        per_layer['w_c'].append(w_x[:, DT_RANK + D_STATE:])                    # (d_inner, d_state)
        per_layer['a_flat'].append((-jnp.exp(p['A_log'])).T.reshape(1, DN))    # hoisted -exp(A_log)
        per_layer['d_vec'].append(p['D'])                                      # (1, d_inner)
        per_layer['w_out'].append(p['w_out'])                                  # (d_inner, d_model)
    stacked = []
    for k in _WEIGHT_ORDER:
        arr = jnp.stack(per_layer[k], axis=0)
        if k in _BF16_WEIGHTS:
            arr = arr.astype(jnp.bfloat16)
        stacked.append(arr)
    return stacked, e_mat, reduce_mat


def mamba_forward(x, layer_params):
    """Full Mamba forward (all residual blocks) in one fused pallas_call."""
    b, l, d = x.shape
    lb = l * b
    stacked, e_mat, reduce_mat = prepare_weights(layer_params)
    # Time-major token slab: row r = t*b + batch_index (cheap XLA transpose outside kernel).
    x2d = jnp.transpose(x, (1, 0, 2)).reshape(lb, d)

    def layer_spec(arr):
        nd = arr.ndim
        blk = (1,) + tuple(int(s) for s in arr.shape[1:])
        return pl.BlockSpec(blk, lambda i, _nd=nd: (i,) + (0,) * (_nd - 1))

    def const_spec(arr):
        nd = arr.ndim
        return pl.BlockSpec(tuple(int(s) for s in arr.shape),
                            lambda i, _nd=nd: (0,) * _nd)

    in_specs = [const_spec(x2d)]
    in_specs += [layer_spec(w) for w in stacked]
    in_specs += [const_spec(e_mat), const_spec(reduce_mat)]   # fetched once (block idx constant)

    out2d = pl.pallas_call(
        functools.partial(mamba_stack_kernel, batch=b),
        out_shape=jax.ShapeDtypeStruct((lb, d), jnp.float32),
        grid_spec=pltpu.PrefetchScalarGridSpec(
            num_scalar_prefetch=0,
            grid=(len(layer_params),),
            in_specs=in_specs,
            out_specs=pl.BlockSpec((lb, d), lambda i: (0, 0)),
        ),
        compiler_params=pltpu.CompilerParams(
            dimension_semantics=("arbitrary",)),          # layers are sequential
    )(x2d, *stacked, e_mat, reduce_mat)

    return jnp.transpose(out2d.reshape(l, b, d), (1, 0, 2))


def init_layer_params(key):
    ks = jax.random.split(key, 6)
    scale = 0.02
    return {
        'rms_w': jnp.ones((1, D_MODEL), jnp.float32),
        'w_in': scale * jax.random.normal(ks[0], (D_MODEL, 2 * D_INNER), jnp.float32),
        'conv_w': scale * jax.random.normal(ks[1], (D_CONV, D_INNER), jnp.float32),
        'conv_b': scale * jax.random.normal(ks[2], (1, D_INNER), jnp.float32),
        'w_x': scale * jax.random.normal(ks[3], (D_INNER, DT_RANK + 2 * D_STATE), jnp.float32),
        'w_dt': scale * jax.random.normal(ks[4], (DT_RANK, D_INNER), jnp.float32),
        'b_dt': jnp.zeros((1, D_INNER), jnp.float32),
        'A_log': jnp.log(jnp.tile(
            jnp.arange(1, D_STATE + 1, dtype=jnp.float32)[None, :], (D_INNER, 1))),
        'D': jnp.ones((1, D_INNER), jnp.float32),
        'w_out': scale * jax.random.normal(ks[5], (D_INNER, D_MODEL), jnp.float32),
    }


def ref_residual_block(x, p):
    """Pure-JAX reference matching the PyTorch semantics (unfused f32 weights)."""
    B, L, _ = x.shape
    ms = jnp.mean(x * x, axis=-1, keepdims=True)
    xn = x * lax.rsqrt(ms + EPS) * p['rms_w'][0]
    xr = xn @ p['w_in']
    xc, res = xr[..., :D_INNER], xr[..., D_INNER:]
    x_pad = jnp.pad(xc, ((0, 0), (D_CONV - 1, 0), (0, 0)))
    conv_out = jnp.broadcast_to(p['conv_b'][0], xc.shape)
    for k in range(D_CONV):
        conv_out = conv_out + x_pad[:, k:k + L, :] * p['conv_w'][k]
    u = jax.nn.silu(conv_out)
    xdbl = u @ p['w_x']
    delta_r = xdbl[..., :DT_RANK]
    Bm = xdbl[..., DT_RANK:DT_RANK + D_STATE]
    Cm = xdbl[..., DT_RANK + D_STATE:]
    delta = jax.nn.softplus(delta_r @ p['w_dt'] + p['b_dt'][0])
    A = -jnp.exp(p['A_log'])
    dA = jnp.exp(delta[..., None] * A)
    dBu = delta[..., None] * Bm[:, :, None, :] * u[..., None]

    def step(state, inp):
        dA_t, dBu_t, C_t = inp
        state = dA_t * state + dBu_t
        return state, jnp.sum(state * C_t[:, None, :], axis=-1)

    state0 = jnp.zeros((B, D_INNER, D_STATE), jnp.float32)
    _, ys = lax.scan(step, state0,
                     (dA.transpose(1, 0, 2, 3), dBu.transpose(1, 0, 2, 3),
                      Cm.transpose(1, 0, 2)))
    y = ys.transpose(1, 0, 2)
    y = y + u * p['D'][0]
    y = y * jax.nn.silu(res)
    return y @ p['w_out'] + x


if __name__ == "__main__":
    B, L = 2, 8
    key = jax.random.PRNGKey(0)
    kx, *lkeys = jax.random.split(key, N_LAYER + 1)
    x = jax.random.normal(kx, (B, L, D_MODEL), jnp.float32)
    layers = [init_layer_params(k) for k in lkeys]

    out = jax.block_until_ready(mamba_forward(x, layers))

    ref = x
    for p in layers:
        ref = ref_residual_block(ref, p)
    ref = jax.block_until_ready(ref)

    max_err = float(jnp.max(jnp.abs(out - ref)))
    assert max_err < 1e-3, f"mismatch vs reference: {max_err}"
    print("KERNEL_OK")
</pallas_src>

<mosaic_0001>
module attributes {stable_mosaic.version = 11 : i64} {
  func.func @mamba_stack_kernel(%arg0: i32, %arg1: memref<16x32xf32, #tpu.memory_space<vmem>>, %arg2: memref<1x1x32xf32, #tpu.memory_space<vmem>>, %arg3: memref<1x32x64xbf16, #tpu.memory_space<vmem>>, %arg4: memref<1x32x64xbf16, #tpu.memory_space<vmem>>, %arg5: memref<1x4x64xf32, #tpu.memory_space<vmem>>, %arg6: memref<1x1x64xf32, #tpu.memory_space<vmem>>, %arg7: memref<1x64x64xbf16, #tpu.memory_space<vmem>>, %arg8: memref<1x1x64xf32, #tpu.memory_space<vmem>>, %arg9: memref<1x64x16xbf16, #tpu.memory_space<vmem>>, %arg10: memref<1x64x16xbf16, #tpu.memory_space<vmem>>, %arg11: memref<1x1x1024xf32, #tpu.memory_space<vmem>>, %arg12: memref<1x1x64xf32, #tpu.memory_space<vmem>>, %arg13: memref<1x64x32xbf16, #tpu.memory_space<vmem>>, %arg14: memref<16x1024xf32, #tpu.memory_space<vmem>>, %arg15: memref<1024x64xf32, #tpu.memory_space<vmem>>, %arg16: memref<16x32xf32, #tpu.memory_space<vmem>>) attributes {dimension_semantics = [#tpu.dimension_semantics<arbitrary>], iteration_bounds = array<i64: 2>, scalar_prefetch = 0 : i64, scratch_operands = 0 : i64, tpu.core_type = #tpu.core_type<tc>, window_params = [{pipeline_mode = #tpu.pipeline_mode<synchronous>, transform_indices = @transform_0, window_bounds = array<i64: 16, 32>}, {transform_indices = @transform_1, window_bounds = array<i64: 1, 1, 32>}, {transform_indices = @transform_2, window_bounds = array<i64: 1, 32, 64>}, {transform_indices = @transform_3, window_bounds = array<i64: 1, 32, 64>}, {transform_indices = @transform_4, window_bounds = array<i64: 1, 4, 64>}, {transform_indices = @transform_5, window_bounds = array<i64: 1, 1, 64>}, {transform_indices = @transform_6, window_bounds = array<i64: 1, 64, 64>}, {transform_indices = @transform_7, window_bounds = array<i64: 1, 1, 64>}, {transform_indices = @transform_8, window_bounds = array<i64: 1, 64, 16>}, {transform_indices = @transform_9, window_bounds = array<i64: 1, 64, 16>}, {transform_indices = @transform_10, window_bounds = array<i64: 1, 1, 1024>}, {transform_indices = @transform_11, window_bounds = array<i64: 1, 1, 64>}, {transform_indices = @transform_12, window_bounds = array<i64: 1, 64, 32>}, {pipeline_mode = #tpu.pipeline_mode<synchronous>, transform_indices = @transform_13, window_bounds = array<i64: 16, 1024>}, {pipeline_mode = #tpu.pipeline_mode<synchronous>, transform_indices = @transform_14, window_bounds = array<i64: 1024, 64>}, {pipeline_mode = #tpu.pipeline_mode<synchronous>, transform_indices = @transform_15, window_bounds = array<i64: 16, 32>}]} {
    %c0_i32 = arith.constant 0 : i32
    %0 = arith.cmpi eq, %arg0, %c0_i32 : i32
    %1 = arith.extui %0 : i1 to i32
    %c0_i32_0 = arith.constant 0 : i32
    %2 = arith.cmpi ne, %1, %c0_i32_0 : i32
    scf.if %2 {
      %c0_65 = arith.constant 0 : index
      %c0_66 = arith.constant 0 : index
      %158 = vector.load %arg1[%c0_65, %c0_66] : memref<16x32xf32, #tpu.memory_space<vmem>>, vector<16x32xf32>
      %c0_67 = arith.constant 0 : index
      %c0_68 = arith.constant 0 : index
      %159 = vector.load %arg16[%c0_67, %c0_68] : memref<16x32xf32, #tpu.memory_space<vmem>>, vector<16x32xf32>
      tpu.vector_store %arg16[%c0_67, %c0_68], %158 {strides = array<i32>} : memref<16x32xf32, #tpu.memory_space<vmem>>, vector<16x32xf32>,
    } else {
    }
    %c0 = arith.constant 0 : index
    %c0_1 = arith.constant 0 : index
    %3 = vector.load %arg16[%c0, %c0_1] : memref<16x32xf32, #tpu.memory_space<vmem>>, vector<16x32xf32>
    %4 = arith.mulf %3, %3 : vector<16x32xf32>
    %cst = arith.constant dense<0.000000e+00> : vector<16xf32>
    %5 = vector.multi_reduction <add>, %4, %cst [1] : vector<16x32xf32> to vector<16xf32>
    %6 = vector.shape_cast %5 : vector<16xf32> to vector<16x1xf32>
    %cst_2 = arith.constant 3.200000e+01 : f32
    %7 = vector.broadcast %cst_2 : f32 to vector<16x1xf32>
    %8 = arith.divf %6, %7 : vector<16x1xf32>
    %cst_3 = arith.constant 9.99999974E-6 : f32
    %9 = vector.broadcast %cst_3 : f32 to vector<16x1xf32>
    %10 = arith.addf %8, %9 : vector<16x1xf32>
    %11 = math.rsqrt %10 : vector<16x1xf32>
    %12 = vector.broadcast %11 : vector<16x1xf32> to vector<16x32xf32>
    %13 = arith.mulf %3, %12 : vector<16x32xf32>
    %c0_4 = arith.constant 0 : index
    %c0_5 = arith.constant 0 : index
    %c0_6 = arith.constant 0 : index
    %14 = vector.load %arg2[%c0_4, %c0_5, %c0_6] : memref<1x1x32xf32, #tpu.memory_space<vmem>>, vector<1x1x32xf32>
    %15 = vector.shape_cast %14 : vector<1x1x32xf32> to vector<1x32xf32>
    %16 = vector.broadcast %15 : vector<1x32xf32> to vector<16x32xf32>
    %17 = arith.mulf %13, %16 : vector<16x32xf32>
    %18 = arith.truncf %17 : vector<16x32xf32> to vector<16x32xbf16>
    %c0_7 = arith.constant 0 : index
    %c0_8 = arith.constant 0 : index
    %c0_9 = arith.constant 0 : index
    %19 = vector.load %arg3[%c0_7, %c0_8, %c0_9] : memref<1x32x64xbf16, #tpu.memory_space<vmem>>, vector<1x32x64xbf16>
    %20 = vector.shape_cast %19 : vector<1x32x64xbf16> to vector<32x64xbf16>
    %cst_10 = arith.constant dense<0.000000e+00> : vector<16x64xf32>
    %21 = tpu.matmul %18, %20, %cst_10 {dimension_numbers = #tpu.dot_dimension_numbers<[1], [0], [0], [1], [0, 0, 1, 1], [], []>} : vector<16x32xbf16>, vector<32x64xbf16>, vector<16x64xf32> -> vector<16x64xf32>
    %c0_11 = arith.constant 0 : index
    %c0_12 = arith.constant 0 : index
    %c0_13 = arith.constant 0 : index
    %22 = vector.load %arg4[%c0_11, %c0_12, %c0_13] : memref<1x32x64xbf16, #tpu.memory_space<vmem>>, vector<1x32x64xbf16>
    %23 = vector.shape_cast %22 : vector<1x32x64xbf16> to vector<32x64xbf16>
    %cst_14 = arith.constant dense<0.000000e+00> : vector<16x64xf32>
    %24 = tpu.matmul %18, %23, %cst_14 {dimension_numbers = #tpu.dot_dimension_numbers<[1], [0], [0], [1], [0, 0, 1, 1], [], []>} : vector<16x32xbf16>, vector<32x64xbf16>, vector<16x64xf32> -> vector<16x64xf32>
    %c0_15 = arith.constant 0 : index
    %c0_16 = arith.constant 0 : index
    %c0_17 = arith.constant 0 : index
    %25 = vector.load %arg5[%c0_15, %c0_16, %c0_17] : memref<1x4x64xf32, #tpu.memory_space<vmem>>, vector<1x4x64xf32>
    %26 = vector.shape_cast %25 : vector<1x4x64xf32> to vector<4x64xf32>
    %c0_18 = arith.constant 0 : index
    %c0_19 = arith.constant 0 : index
    %c0_20 = arith.constant 0 : index
    %27 = vector.load %arg6[%c0_18, %c0_19, %c0_20] : memref<1x1x64xf32, #tpu.memory_space<vmem>>, vector<1x1x64xf32>
    %28 = vector.shape_cast %27 : vector<1x1x64xf32> to vector<1x64xf32>
    %29 = vector.shape_cast %28 : vector<1x64xf32> to vector<1x64xf32>
    %30 = vector.broadcast %29 : vector<1x64xf32> to vector<16x64xf32>
    %31 = vector.extract_strided_slice %26 {offsets = [0, 0], sizes = [1, 64], strides = [1, 1]} : vector<4x64xf32> to vector<1x64xf32>
    %cst_21 = arith.constant 0.000000e+00 : f32
    %32 = vector.broadcast %cst_21 : f32 to vector<6x64xf32>
    %33 = vector.extract_strided_slice %21 {offsets = [0, 0], sizes = [10, 64], strides = [1, 1]} : vector<16x64xf32> to vector<10x64xf32>
    %34 = tpu.concatenate %32, %33 in 0 : vector<6x64xf32>, vector<10x64xf32> -> vector<16x64xf32>
    %35 = vector.broadcast %31 : vector<1x64xf32> to vector<16x64xf32>
    %36 = arith.mulf %34, %35 : vector<16x64xf32>
    %37 = arith.addf %30, %36 : vector<16x64xf32>
    %38 = vector.extract_strided_slice %26 {offsets = [1, 0], sizes = [1, 64], strides = [1, 1]} : vector<4x64xf32> to vector<1x64xf32>
    %cst_22 = arith.constant 0.000000e+00 : f32
    %39 = vector.broadcast %cst_22 : f32 to vector<4x64xf32>
    %40 = vector.extract_strided_slice %21 {offsets = [0, 0], sizes = [12, 64], strides = [1, 1]} : vector<16x64xf32> to vector<12x64xf32>
    %41 = tpu.concatenate %39, %40 in 0 : vector<4x64xf32>, vector<12x64xf32> -> vector<16x64xf32>
    %42 = vector.broadcast %38 : vector<1x64xf32> to vector<16x64xf32>
    %43 = arith.mulf %41, %42 : vector<16x64xf32>
    %44 = arith.addf %37, %43 : vector<16x64xf32>
    %45 = vector.extract_strided_slice %26 {offsets = [2, 0], sizes = [1, 64], strides = [1, 1]} : vector<4x64xf32> to vector<1x64xf32>
    %cst_23 = arith.constant 0.000000e+00 : f32
    %46 = vector.broadcast %cst_23 : f32 to vector<2x64xf32>
    %47 = vector.extract_strided_slice %21 {offsets = [0, 0], sizes = [14, 64], strides = [1, 1]} : vector<16x64xf32> to vector<14x64xf32>
    %48 = tpu.concatenate %46, %47 in 0 : vector<2x64xf32>, vector<14x64xf32> -> vector<16x64xf32>
    %49 = vector.broadcast %45 : vector<1x64xf32> to vector<16x64xf32>
    %50 = arith.mulf %48, %49 : vector<16x64xf32>
    %51 = arith.addf %44, %50 : vector<16x64xf32>
    %52 = vector.extract_strided_slice %26 {offsets = [3, 0], sizes = [1, 64], strides = [1, 1]} : vector<4x64xf32> to vector<1x64xf32>
    %53 = vector.broadcast %52 : vector<1x64xf32> to vector<16x64xf32>
    %54 = arith.mulf %21, %53 : vector<16x64xf32>
    %55 = arith.addf %51, %54 : vector<16x64xf32>
    %56 = arith.negf %55 : vector<16x64xf32>
    %57 = math.exp %56 : vector<16x64xf32>
    %cst_24 = arith.constant 1.000000e+00 : f32
    %58 = vector.broadcast %cst_24 : f32 to vector<16x64xf32>
    %59 = arith.addf %58, %57 : vector<16x64xf32>
    %60 = arith.divf %58, %59 : vector<16x64xf32>
    %61 = arith.mulf %55, %60 : vector<16x64xf32>
    %62 = arith.truncf %61 : vector<16x64xf32> to vector<16x64xbf16>
    %c0_25 = arith.constant 0 : index
    %c0_26 = arith.constant 0 : index
    %c0_27 = arith.constant 0 : index
    %63 = vector.load %arg7[%c0_25, %c0_26, %c0_27] : memref<1x64x64xbf16, #tpu.memory_space<vmem>>, vector<1x64x64xbf16>
    %64 = vector.shape_cast %63 : vector<1x64x64xbf16> to vector<64x64xbf16>
    %cst_28 = arith.constant dense<0.000000e+00> : vector<16x64xf32>
    %65 = tpu.matmul %62, %64, %cst_28 {dimension_numbers = #tpu.dot_dimension_numbers<[1], [0], [0], [1], [0, 0, 1, 1], [], []>} : vector<16x64xbf16>, vector<64x64xbf16>, vector<16x64xf32> -> vector<16x64xf32>
    %c0_29 = arith.constant 0 : index
    %c0_30 = arith.constant 0 : index
    %c0_31 = arith.constant 0 : index
    %66 = vector.load %arg8[%c0_29, %c0_30, %c0_31] : memref<1x1x64xf32, #tpu.memory_space<vmem>>, vector<1x1x64xf32>
    %67 = vector.shape_cast %66 : vector<1x1x64xf32> to vector<1x64xf32>
    %68 = vector.broadcast %67 : vector<1x64xf32> to vector<16x64xf32>
    %69 = arith.addf %65, %68 : vector<16x64xf32>
    %cst_32 = arith.constant 0.000000e+00 : f32
    %70 = vector.broadcast %cst_32 : f32 to vector<16x64xf32>
    %71 = arith.maximumf %69, %70 : vector<16x64xf32>
    %72 = vector.broadcast %cst_32 : f32 to vector<16x64xf32>
    %73 = arith.subf %69, %72 : vector<16x64xf32>
    %74 = arith.cmpf one, %73, %73 : vector<16x64xf32>
    %75 = vector.broadcast %cst_32 : f32 to vector<16x64xf32>
    %76 = arith.addf %69, %75 : vector<16x64xf32>
    %77 = math.absf %73 : vector<16x64xf32>
    %cst_33 = arith.constant 0.000000e+00 : f32
    %78 = vector.broadcast %cst_33 : f32 to vector<16x64xf32>
    %79 = arith.subf %78, %77 : vector<16x64xf32>
    %80 = math.exp %79 : vector<16x64xf32>
    %81 = math.log1p %80 : vector<16x64xf32>
    %82 = arith.addf %71, %81 : vector<16x64xf32>
    %83 = arith.select %74, %76, %82 : vector<16x64xi1>, vector<16x64xf32>
    %c0_34 = arith.constant 0 : index
    %c0_35 = arith.constant 0 : index
    %c0_36 = arith.constant 0 : index
    %84 = vector.load %arg9[%c0_34, %c0_35, %c0_36] : memref<1x64x16xbf16, #tpu.memory_space<vmem>>, vector<1x64x16xbf16>
    %85 = vector.shape_cast %84 : vector<1x64x16xbf16> to vector<64x16xbf16>
    %cst_37 = arith.constant dense<0.000000e+00> : vector<16x16xf32>
    %86 = tpu.matmul %62, %85, %cst_37 {dimension_numbers = #tpu.dot_dimension_numbers<[1], [0], [0], [1], [0, 0, 1, 1], [], []>} : vector<16x64xbf16>, vector<64x16xbf16>, vector<16x16xf32> -> vector<16x16xf32>
    %c0_38 = arith.constant 0 : index
    %c0_39 = arith.constant 0 : index
    %c0_40 = arith.constant 0 : index
    %87 = vector.load %arg10[%c0_38, %c0_39, %c0_40] : memref<1x64x16xbf16, #tpu.memory_space<vmem>>, vector<1x64x16xbf16>
    %88 = vector.shape_cast %87 : vector<1x64x16xbf16> to vector<64x16xbf16>
    %cst_41 = arith.constant dense<0.000000e+00> : vector<16x16xf32>
    %89 = tpu.matmul %62, %88, %cst_41 {dimension_numbers = #tpu.dot_dimension_numbers<[1], [0], [0], [1], [0, 0, 1, 1], [], []>} : vector<16x64xbf16>, vector<64x16xbf16>, vector<16x16xf32> -> vector<16x16xf32>
    %c0_42 = arith.constant 0 : index
    %c0_43 = arith.constant 0 : index
    %90 = vector.load %arg14[%c0_42, %c0_43] : memref<16x1024xf32, #tpu.memory_space<vmem>>, vector<16x1024xf32>
    %cst_44 = arith.constant dense<0.000000e+00> : vector<16x1024xf32>
    %91 = tpu.matmul %86, %90, %cst_44 {dimension_numbers = #tpu.dot_dimension_numbers<[1], [0], [0], [1], [0, 0, 1, 1], [], []>} : vector<16x16xf32>, vector<16x1024xf32>, vector<16x1024xf32> -> vector<16x1024xf32>
    %c0_45 = arith.constant 0 : index
    %c0_46 = arith.constant 0 : index
    %92 = vector.load %arg14[%c0_45, %c0_46] : memref<16x1024xf32, #tpu.memory_space<vmem>>, vector<16x1024xf32>
    %cst_47 = arith.constant dense<0.000000e+00> : vector<16x1024xf32>
    %93 = tpu.matmul %89, %92, %cst_47 {dimension_numbers = #tpu.dot_dimension_numbers<[1], [0], [0], [1], [0, 0, 1, 1], [], []>} : vector<16x16xf32>, vector<16x1024xf32>, vector<16x1024xf32> -> vector<16x1024xf32>
    %94 = tpu.concatenate %83, %83, %83, %83, %83, %83, %83, %83, %83, %83, %83, %83, %83, %83, %83, %83 in 1 : vector<16x64xf32>, vector<16x64xf32>, vector<16x64xf32>, vector<16x64xf32>, vector<16x64xf32>, vector<16x64xf32>, vector<16x64xf32>, vector<16x64xf32>, vector<16x64xf32>, vector<16x64xf32>, vector<16x64xf32>, vector<16x64xf32>, vector<16x64xf32>, vector<16x64xf32>, vector<16x64xf32>, vector<16x64xf32> -> vector<16x1024xf32>
    %c0_48 = arith.constant 0 : index
    %c0_49 = arith.constant 0 : index
    %c0_50 = arith.constant 0 : index
    %95 = vector.load %arg11[%c0_48, %c0_49, %c0_50] : memref<1x1x1024xf32, #tpu.memory_space<vmem>>, vector<1x1x1024xf32>
    %96 = vector.shape_cast %95 : vector<1x1x1024xf32> to vector<1x1024xf32>
    %97 = vector.broadcast %96 : vector<1x1024xf32> to vector<16x1024xf32>
    %98 = arith.mulf %94, %97 : vector<16x1024xf32>
    %99 = math.exp %98 : vector<16x1024xf32>
    %100 = arith.mulf %83, %61 : vector<16x64xf32>
    %101 = tpu.concatenate %100, %100, %100, %100, %100, %100, %100, %100, %100, %100, %100, %100, %100, %100, %100, %100 in 1 : vector<16x64xf32>, vector<16x64xf32>, vector<16x64xf32>, vector<16x64xf32>, vector<16x64xf32>, vector<16x64xf32>, vector<16x64xf32>, vector<16x64xf32>, vector<16x64xf32>, vector<16x64xf32>, vector<16x64xf32>, vector<16x64xf32>, vector<16x64xf32>, vector<16x64xf32>, vector<16x64xf32>, vector<16x64xf32> -> vector<16x1024xf32>
    %102 = arith.mulf %101, %91 : vector<16x1024xf32>
    %cst_51 = arith.constant 0.000000e+00 : f32
    %103 = vector.broadcast %cst_51 : f32 to vector<2x1024xf32>
    %104 = vector.extract_strided_slice %99 {offsets = [0, 0], sizes = [2, 1024], strides = [1, 1]} : vector<16x1024xf32> to vector<2x1024xf32>
    %105 = arith.mulf %104, %103 : vector<2x1024xf32>
    %106 = vector.extract_strided_slice %102 {offsets = [0, 0], sizes = [2, 1024], strides = [1, 1]} : vector<16x1024xf32> to vector<2x1024xf32>
    %107 = arith.addf %105, %106 : vector<2x1024xf32>
    %108 = vector.extract_strided_slice %99 {offsets = [2, 0], sizes = [2, 1024], strides = [1, 1]} : vector<16x1024xf32> to vector<2x1024xf32>
    %109 = arith.mulf %108, %107 : vector<2x1024xf32>
    %110 = vector.extract_strided_slice %102 {offsets = [2, 0], sizes = [2, 1024], strides = [1, 1]} : vector<16x1024xf32> to vector<2x1024xf32>
    %111 = arith.addf %109, %110 : vector<2x1024xf32>
    %112 = vector.extract_strided_slice %99 {offsets = [4, 0], sizes = [2, 1024], strides = [1, 1]} : vector<16x1024xf32> to vector<2x1024xf32>
    %113 = arith.mulf %112, %111 : vector<2x1024xf32>
    %114 = vector.extract_strided_slice %102 {offsets = [4, 0], sizes = [2, 1024], strides = [1, 1]} : vector<16x1024xf32> to vector<2x1024xf32>
    %115 = arith.addf %113, %114 : vector<2x1024xf32>
    %116 = vector.extract_strided_slice %99 {offsets = [6, 0], sizes = [2, 1024], strides = [1, 1]} : vector<16x1024xf32> to vector<2x1024xf32>
    %117 = arith.mulf %116, %115 : vector<2x1024xf32>
    %118 = vector.extract_strided_slice %102 {offsets = [6, 0], sizes = [2, 1024], strides = [1, 1]} : vector<16x1024xf32> to vector<2x1024xf32>
    %119 = arith.addf %117, %118 : vector<2x1024xf32>
    %120 = vector.extract_strided_slice %99 {offsets = [8, 0], sizes = [2, 1024], strides = [1, 1]} : vector<16x1024xf32> to vector<2x1024xf32>
    %121 = arith.mulf %120, %119 : vector<2x1024xf32>
    %122 = vector.extract_strided_slice %102 {offsets = [8, 0], sizes = [2, 1024], strides = [1, 1]} : vector<16x1024xf32> to vector<2x1024xf32>
    %123 = arith.addf %121, %122 : vector<2x1024xf32>
    %124 = vector.extract_strided_slice %99 {offsets = [10, 0], sizes = [2, 1024], strides = [1, 1]} : vector<16x1024xf32> to vector<2x1024xf32>
    %125 = arith.mulf %124, %123 : vector<2x1024xf32>
    %126 = vector.extract_strided_slice %102 {offsets = [10, 0], sizes = [2, 1024], strides = [1, 1]} : vector<16x1024xf32> to vector<2x1024xf32>
    %127 = arith.addf %125, %126 : vector<2x1024xf32>
    %128 = vector.extract_strided_slice %99 {offsets = [12, 0], sizes = [2, 1024], strides = [1, 1]} : vector<16x1024xf32> to vector<2x1024xf32>
    %129 = arith.mulf %128, %127 : vector<2x1024xf32>
    %130 = vector.extract_strided_slice %102 {offsets = [12, 0], sizes = [2, 1024], strides = [1, 1]} : vector<16x1024xf32> to vector<2x1024xf32>
    %131 = arith.addf %129, %130 : vector<2x1024xf32>
    %132 = vector.extract_strided_slice %99 {offsets = [14, 0], sizes = [2, 1024], strides = [1, 1]} : vector<16x1024xf32> to vector<2x1024xf32>
    %133 = arith.mulf %132, %131 : vector<2x1024xf32>
    %134 = vector.extract_strided_slice %102 {offsets = [14, 0], sizes = [2, 1024], strides = [1, 1]} : vector<16x1024xf32> to vector<2x1024xf32>
    %135 = arith.addf %133, %134 : vector<2x1024xf32>
    %136 = tpu.concatenate %107, %111, %115, %119, %123, %127, %131, %135 in 0 : vector<2x1024xf32>, vector<2x1024xf32>, vector<2x1024xf32>, vector<2x1024xf32>, vector<2x1024xf32>, vector<2x1024xf32>, vector<2x1024xf32>, vector<2x1024xf32> -> vector<16x1024xf32>
    %137 = arith.mulf %136, %93 : vector<16x1024xf32>
    %c0_52 = arith.constant 0 : index
    %c0_53 = arith.constant 0 : index
    %138 = vector.load %arg15[%c0_52, %c0_53] : memref<1024x64xf32, #tpu.memory_space<vmem>>, vector<1024x64xf32>
    %cst_54 = arith.constant dense<0.000000e+00> : vector<16x64xf32>
    %139 = tpu.matmul %137, %138, %cst_54 {dimension_numbers = #tpu.dot_dimension_numbers<[1], [0], [0], [1], [0, 0, 1, 1], [], []>} : vector<16x1024xf32>, vector<1024x64xf32>, vector<16x64xf32> -> vector<16x64xf32>
    %c0_55 = arith.constant 0 : index
    %c0_56 = arith.constant 0 : index
    %c0_57 = arith.constant 0 : index
    %140 = vector.load %arg12[%c0_55, %c0_56, %c0_57] : memref<1x1x64xf32, #tpu.memory_space<vmem>>, vector<1x1x64xf32>
    %141 = vector.shape_cast %140 : vector<1x1x64xf32> to vector<1x64xf32>
    %142 = vector.broadcast %141 : vector<1x64xf32> to vector<16x64xf32>
    %143 = arith.mulf %61, %142 : vector<16x64xf32>
    %144 = arith.addf %139, %143 : vector<16x64xf32>
    %145 = arith.negf %24 : vector<16x64xf32>
    %146 = math.exp %145 : vector<16x64xf32>
    %cst_58 = arith.constant 1.000000e+00 : f32
    %147 = vector.broadcast %cst_58 : f32 to vector<16x64xf32>
    %148 = arith.addf %147, %146 : vector<16x64xf32>
    %149 = arith.divf %147, %148 : vector<16x64xf32>
    %150 = arith.mulf %24, %149 : vector<16x64xf32>
    %151 = arith.mulf %144, %150 : vector<16x64xf32>
    %152 = arith.truncf %151 : vector<16x64xf32> to vector<16x64xbf16>
    %c0_59 = arith.constant 0 : index
    %c0_60 = arith.constant 0 : index
    %c0_61 = arith.constant 0 : index
    %153 = vector.load %arg13[%c0_59, %c0_60, %c0_61] : memref<1x64x32xbf16, #tpu.memory_space<vmem>>, vector<1x64x32xbf16>
    %154 = vector.shape_cast %153 : vector<1x64x32xbf16> to vector<64x32xbf16>
    %cst_62 = arith.constant dense<0.000000e+00> : vector<16x32xf32>
    %155 = tpu.matmul %152, %154, %cst_62 {dimension_numbers = #tpu.dot_dimension_numbers<[1], [0], [0], [1], [0, 0, 1, 1], [], []>} : vector<16x64xbf16>, vector<64x32xbf16>, vector<16x32xf32> -> vector<16x32xf32>
    %156 = arith.addf %3, %155 : vector<16x32xf32>
    %c0_63 = arith.constant 0 : index
    %c0_64 = arith.constant 0 : index
    %157 = vector.load %arg16[%c0_63, %c0_64] : memref<16x32xf32, #tpu.memory_space<vmem>>, vector<16x32xf32>
    tpu.vector_store %arg16[%c0_63, %c0_64], %156 {strides = array<i32>} : memref<16x32xf32, #tpu.memory_space<vmem>>, vector<16x32xf32>,
    return
  }
  func.func @transform_0(%arg0: i32) -> (i32, i32) {
    %c0_i32 = arith.constant 0 : i32
    %c0_i32_0 = arith.constant 0 : i32
    %c0_i32_1 = arith.constant 0 : i32
    return %c0_i32, %c0_i32_0 : i32, i32
  }
  func.func @transform_1(%arg0: i32) -> (i32, i32, i32) {
    %c0_i32 = arith.constant 0 : i32
    %c0_i32_0 = arith.constant 0 : i32
    %c0_i32_1 = arith.constant 0 : i32
    return %arg0, %c0_i32, %c0_i32_0 : i32, i32, i32
  }
  func.func @transform_2(%arg0: i32) -> (i32, i32, i32) {
    %c0_i32 = arith.constant 0 : i32
    %c0_i32_0 = arith.constant 0 : i32
    %c0_i32_1 = arith.constant 0 : i32
    return %arg0, %c0_i32, %c0_i32_0 : i32, i32, i32
  }
  func.func @transform_3(%arg0: i32) -> (i32, i32, i32) {
    %c0_i32 = arith.constant 0 : i32
    %c0_i32_0 = arith.constant 0 : i32
    %c0_i32_1 = arith.constant 0 : i32
    return %arg0, %c0_i32, %c0_i32_0 : i32, i32, i32
  }
  func.func @transform_4(%arg0: i32) -> (i32, i32, i32) {
    %c0_i32 = arith.constant 0 : i32
    %c0_i32_0 = arith.constant 0 : i32
    %c0_i32_1 = arith.constant 0 : i32
    return %arg0, %c0_i32, %c0_i32_0 : i32, i32, i32
  }
  func.func @transform_5(%arg0: i32) -> (i32, i32, i32) {
    %c0_i32 = arith.constant 0 : i32
    %c0_i32_0 = arith.constant 0 : i32
    %c0_i32_1 = arith.constant 0 : i32
    return %arg0, %c0_i32, %c0_i32_0 : i32, i32, i32
  }
  func.func @transform_6(%arg0: i32) -> (i32, i32, i32) {
    %c0_i32 = arith.constant 0 : i32
    %c0_i32_0 = arith.constant 0 : i32
    %c0_i32_1 = arith.constant 0 : i32
    return %arg0, %c0_i32, %c0_i32_0 : i32, i32, i32
  }
  func.func @transform_7(%arg0: i32) -> (i32, i32, i32) {
    %c0_i32 = arith.constant 0 : i32
    %c0_i32_0 = arith.constant 0 : i32
    %c0_i32_1 = arith.constant 0 : i32
    return %arg0, %c0_i32, %c0_i32_0 : i32, i32, i32
  }
  func.func @transform_8(%arg0: i32) -> (i32, i32, i32) {
    %c0_i32 = arith.constant 0 : i32
    %c0_i32_0 = arith.constant 0 : i32
    %c0_i32_1 = arith.constant 0 : i32
    return %arg0, %c0_i32, %c0_i32_0 : i32, i32, i32
  }
  func.func @transform_9(%arg0: i32) -> (i32, i32, i32) {
    %c0_i32 = arith.constant 0 : i32
    %c0_i32_0 = arith.constant 0 : i32
    %c0_i32_1 = arith.constant 0 : i32
    return %arg0, %c0_i32, %c0_i32_0 : i32, i32, i32
  }
  func.func @transform_10(%arg0: i32) -> (i32, i32, i32) {
    %c0_i32 = arith.constant 0 : i32
    %c0_i32_0 = arith.constant 0 : i32
    %c0_i32_1 = arith.constant 0 : i32
    return %arg0, %c0_i32, %c0_i32_0 : i32, i32, i32
  }
  func.func @transform_11(%arg0: i32) -> (i32, i32, i32) {
    %c0_i32 = arith.constant 0 : i32
    %c0_i32_0 = arith.constant 0 : i32
    %c0_i32_1 = arith.constant 0 : i32
    return %arg0, %c0_i32, %c0_i32_0 : i32, i32, i32
  }
  func.func @transform_12(%arg0: i32) -> (i32, i32, i32) {
    %c0_i32 = arith.constant 0 : i32
    %c0_i32_0 = arith.constant 0 : i32
    %c0_i32_1 = arith.constant 0 : i32
    return %arg0, %c0_i32, %c0_i32_0 : i32, i32, i32
  }
  func.func @transform_13(%arg0: i32) -> (i32, i32) {
    %c0_i32 = arith.constant 0 : i32
    %c0_i32_0 = arith.constant 0 : i32
    %c0_i32_1 = arith.constant 0 : i32
    return %c0_i32, %c0_i32_0 : i32, i32
  }
  func.func @transform_14(%arg0: i32) -> (i32, i32) {
    %c0_i32 = arith.constant 0 : i32
    %c0_i32_0 = arith.constant 0 : i32
    %c0_i32_1 = arith.constant 0 : i32
    return %c0_i32, %c0_i32_0 : i32, i32
  }
  func.func @transform_15(%arg0: i32) -> (i32, i32) {
    %c0_i32 = arith.constant 0 : i32
    %c0_i32_0 = arith.constant 0 : i32
    %c0_i32_1 = arith.constant 0 : i32
    return %c0_i32, %c0_i32_0 : i32, i32
  }
}

</mosaic_0001>

<bundles_post_ra>
// kernel: tpu_custom_call.1
= control target key start
LH: loop header
LB: loop body
LE: loop exit
PB: predicated region body
PF: predicated region fallthrough
CT: control target
= control target key end

     0   :  { %s5027_s0 = inlined_call_operand.vmem [shape: f32[16,32], index: 0, kind: input, shape index: {}]   ;;  %s5028_s1 = inlined_call_operand.vmem [shape: f32[2,1,32], index: 1, kind: input, shape index: {}]   ;;  %s5029_s2 = inlined_call_operand.vmem [shape: bf16[2,32,64], index: 2, kind: input, shape index: {}]   ;;  %s5030_s3 = inlined_call_operand.vmem [shape: bf16[2,32,64], index: 3, kind: input, shape index: {}]   ;;  %s5031_s4 = inlined_call_operand.vmem [shape: f32[2,4,64], index: 4, kind: input, shape index: {}]   ;;  %s5032_s5 = inlined_call_operand.vmem [shape: f32[2,1,64], index: 5, kind: input, shape index: {}]   ;;  %s5033_s6 = inlined_call_operand.vmem [shape: bf16[2,64,64], index: 6, kind: input, shape index: {}]   ;;  %s5034_s7 = inlined_call_operand.vmem [shape: f32[2,1,64], index: 7, kind: input, shape index: {}]   ;;  %s5035_s8 = inlined_call_operand.vmem [shape: bf16[2,64,16], index: 8, kind: input, shape index: {}]   ;;  %s5036_s9 = inlined_call_operand.vmem [shape: bf16[2,64,16], index: 9, kind: input, shape index: {}]   ;;  %s5037_s10 = inlined_call_operand.vmem [shape: f32[2,1,1024], index: 10, kind: input, shape index: {}]   ;;  %s5038_s11 = inlined_call_operand.vmem [shape: f32[2,1,64], index: 11, kind: input, shape index: {}]   ;;  %s5039_s12 = inlined_call_operand.vmem [shape: bf16[2,64,32], index: 12, kind: input, shape index: {}]   ;;  %s5040_s13 = inlined_call_operand.vmem [shape: f32[16,1024], index: 13, kind: input, shape index: {}]   ;;  %s5041_s14 = inlined_call_operand.vmem [shape: f32[1024,64], index: 14, kind: input, shape index: {}]   ;;  %s5042_s15 = inlined_call_operand.hbm [shape: f32[16,32], index: 15, kind: output, shape index: {}]  }
   0x1   :  { %5094 = sst [smem:[#allocation54_spill]] %s5029_s2 }
   0x2   :  { %5095 = sst [smem:[#allocation55_spill]] %s5030_s3 }
   0x3   :  { %5096 = sst [smem:[#allocation56_spill]] %s5031_s4 }
   0x4   :  { %5097 = sst [smem:[#allocation57_spill]] %s5033_s6 }
   0x5   :  { %5098 = sst [smem:[#allocation58_spill]] %s5040_s13 }
   0x6   :  { %5099 = sst [smem:[#allocation59_spill]] %s5041_s14 }
   0x7   :  { %5100 = sst [smem:[#allocation60_spill]] %s5042_s15 }
   0x8   :  { %20 = vsyncpa [#allocation3], 0  ;;  %s3714_s18 = smov 0  }
   0x9 LB: > { %5101 = sst [smem:[#allocation5_spill]] %s3626_s18  ;;  %s3720_s19 = sadd.s32 4294967295, %s3626_s18   ;;  %s3626_s18 = sphi %s3714_s18, %s26_s18  }
   0xa   : > { %p3010_p0 = scmp.ge.s32.totalorder %s3626_s18, 1  ;;  %p533_p1 = scmp.lt.s32.totalorder %s3626_s18, 3 }
   0xc   : > { %p534_p2 = pnand %p3010_p0, %p533_p1 }
   0xe   : > { %537 = sbr.rel (%p534_p2) target bundleno = 1444 (0x5a4), region = 80 }
  0x15   : > { %p621_p3 = scmp.lt.s32.totalorder %s3720_s19, 1  ;;  %s5102_s2 = sld [smem:[#allocation54_spill]] }
  0x16   : > { %s5103_s3 = sld [smem:[#allocation55_spill]]  ;;  %s5104_s4 = sld [smem:[#allocation56_spill]] }
  0x17   : > { %s3726_s20 = scalar_select %p621_p3, %s3720_s19, 1 }
  0x18   : > { %s5105_s6 = sld [smem:[#allocation57_spill]]  ;;  %p3025_p4 = scmp.ne.s32.totalorder %s3720_s19, 0 }
  0x19   : > { %s3080_s24 = sshll.u32 %s3726_s20, 4  ;;  %s3015_s16 = sshll.u32 %s3726_s20, 2  ;;  %v676_v0 = vld [vmem:[%s5027_s0] sm:$0xff] (!%p3025_p4)  ;;  %vm678_vm0 = vcmask (!%p3025_p4), 261120   ;;  %v677_v1 = vld [vmem:[%s5027_s0 + $0x8] sm:$0xff] (!%p3025_p4) }
  0x1a   : > { %s3082_s14 = sshll.u32 %s3726_s20, 5  ;;  %s3022_s18 = sshll.u32 %s3726_s20, 3  ;;  %679 = vst.msk [vmem:[#allocation2] sm:$0xff] (!%p3025_p4), %vm678_vm0, %v676_v0  ;;  %680 = vst.msk [vmem:[#allocation2 + $0x8] sm:$0xff] (!%p3025_p4), %vm678_vm0, %v677_v1 }
  0x1b   : > { %s3736_s27 = scalar_lea.vmem %s5102_s2, %s3080_s24  ;;  %s3766_s17 = scalar_lea.vmem %s5035_s8, %s3082_s14 }
  0x1c   : > { %s3741_s30 = scalar_lea.vmem %s5103_s3, %s3080_s24  ;;  %s3751_s23 = scalar_lea.vmem %s5104_s4, %s3015_s16 }
  0x1d   : > { %s3771_s15 = scalar_lea.vmem %s5036_s9, %s3082_s14  ;;  %s665_s13 = scalar_lea.vmem %s5038_s11, %s3726_s20 }
  0x1e   : > { %s3757_s26 = scalar_lea.vmem %s5105_s6, %s3082_s14  ;;  %s3781_s2 = scalar_lea.vmem %s5037_s10, %s3022_s18 }
  0x1f   : > { %s3786_s3 = scalar_lea.vmem %s5039_s12, %s3082_s14  ;;  %675 = sbr.rel (%p3025_p4) target bundleno = 38 (0x26), region = 84 }
  0x26 PF: > { %v681_v2 = vld [vmem:[#allocation2] sm:$0xff]  ;;  %vm685_vm1 = vcmask 261120   ;;  %v682_v3 = vld [vmem:[#allocation2 + $0x8] sm:$0xff]  ;;  %v5047_v9 = vmov 0.0   ;;  %vm3629_vm2 = vmmov 0   ;;  %v3516_v31 = vld [vmem:[%s3757_s26 + $0x10] sm:$0xff]   ;;  %v845_v38 = vlaneseq  ;;  %s5114_s25 = scalar_lea.vmem %s5034_s7, %s3726_s20 }
  0x27   : > { %v683_v4 = vmul.f32 %v681_v2, %v681_v2  ;;  %v684_v5 = vmul.f32 %v682_v3, %v682_v3  ;;  %v3508_v8 = vld [vmem:[%s3736_s27] sm:$0xff]   ;;  %3264 = vmatprep.subr.bf16.mxu1 %v5047_v9  ;;  %3268 = vmatprep.mubr.msk.bf16.mxu1 %vm3629_vm2, %v5047_v9  ;;  %v3509_v10 = vld [vmem:[%s3736_s27 + $0x8] sm:$0xff]   ;;  %s5106_s27 = scalar_lea.vmem %s5028_s1, %s3726_s20  ;;  %v3517_v32 = vld [vmem:[%s3766_s17 + $0x10] sm:$0xff]   ;;  %s5107_s18 = sld [smem:[#allocation58_spill]]  ;;  %vm838_vm3 = vcmask 1045504   ;;  %vm853_vm4 = vcmask 1043456  }
  0x28   : > { %3265 = vmatpush3.bf16.msra.mxu1 %v3508_v8  ;;  %3280 = vmatprep.subr.bf16.mxu0 %v5047_v9  ;;  %v3026_v20 = vld [vmem:[%s5106_s27] ss:$0 sm:$0xff]  ;;  %v3511_v26 = vld [vmem:[%s3741_s30 + $0x8] sm:$0xff]   ;;  %v3518_v33 = vld [vmem:[%s3757_s26 + $0x18] sm:$0xff]   ;;  %v3846_v39 = vshrl.u32 %v845_v38, 7  ;;  %vm868_vm5 = vcmask 1041408  }
  0x29   : > { %v686_v6 = vsel %vm685_vm1, %v683_v4, 0.0  ;;  %v689_v7 = vsel %vm685_vm1, %v684_v5, 0.0  ;;  %3266 = vmatprep.subr.bf16.mxu1 %v5047_v9  ;;  %3288 = vmatprep.mubr.msk.bf16.mxu0 %vm3629_vm2, %v5047_v9  ;;  %v3510_v24 = vld [vmem:[%s3741_s30] sm:$0xff]   ;;  %v3514_v29 = vld [vmem:[%s3757_s26 + $0x8] sm:$0xff]   ;;  %v3519_v34 = vld [vmem:[%s3766_s17 + $0x18] sm:$0xff]   ;;  %vm945_vm6 = vcmask 523264  }
  0x2a   : > { %687 = vadd.xlane.f32.xlu0 %v686_v6  ;;  %v3512_v27 = vld [vmem:[%s3757_s26] sm:$0xff]   ;;  %v3515_v30 = vld [vmem:[%s3766_s17 + $0x8] sm:$0xff]   ;;  %v847_v40 = vsub.s32 0, %v3846_v39  ;;  %v862_v41 = vsub.s32 1, %v3846_v39  ;;  %v877_v45 = vsub.s32 2, %v3846_v39  ;;  %v885_v49 = vsub.s32 3, %v3846_v39 }
  0x2b   : > { %v3513_v28 = vld [vmem:[%s3766_s17] sm:$0xff]   ;;  %3281 = vmatpush3.bf16.msra.mxu0 %v3512_v27  ;;  %s5109_s17 = scalar_lea.vmem %s5032_s5, %s3726_s20  ;;  %vm1188_vm7 = vcmask 130048   ;;  %s5115_s4 = sld [smem:[#allocation59_spill]] }
  0x2c   : > { %3267 = vmatpush3.bf16.msra.mxu1 %v3509_v10  ;;  %3282 = vmatprep.subr.bf16.mxu0 %v5047_v9  ;;  %v828_v42 = vld [vmem:[%s3751_s23] sm:$0xf]  ;;  %s3631_s20 = smov [#allocation2]   ;;  %p3492_p5 = scmp.eq.s32.totalorder %s3720_s19, 1 }
  0x2d   : > { %3272 = vmatprep.subr.bf16.mxu1 %v5047_v9  ;;  %s5108_s16 = smov %s5107_s18  ;;  %v1173_v35 = vld [vmem:[%s5107_s18 + $0x8] sm:$0xff]  ;;  %v848_v44 = vrot.slane %v828_v42, %v847_v40  ;;  %v863_v51 = vrot.slane %v828_v42, %v862_v41  ;;  %v3033_v53 = vld [vmem:[%s5109_s17] ss:$0 sm:$0xff]  ;;  %v878_v59 = vrot.slane %v828_v42, %v877_v45  ;;  %v886_v62 = vrot.slane %v828_v42, %v885_v49  ;;  %s3630_s17 = smov 64  }
  0x2e   : > { %690 = vadd.xlane.f32.xlu0 %v689_v7  ;;  %v1181_v36 = vld [vmem:[%s5108_s16 + $0x48] sm:$0xff] }
  0x2f   : > { %3283 = vmatpush3.bf16.msra.mxu0 %v3514_v29  ;;  %v3843_v37 = vpack.c.bf16 %v1181_v36, %v1173_v35  ;;  %v3520_v35 = vld [vmem:[%s3771_s15] sm:$0xff]   ;;  %v3521_v42 = vld [vmem:[%s3771_s15 + $0x8] sm:$0xff]  }
  0x30   : > { %3284 = vmatprep.subr.bf16.mxu0 %v5047_v9 }
  0x33   : > { %3285 = vmatpush3.bf16.msra.mxu0 %v3516_v31  ;;  %v1172_v31 = vld [vmem:[%s5108_s16] sm:$0xff] }
  0x34   : > { %3286 = vmatprep.subr.bf16.mxu0 %v5047_v9 }
  0x37   : > { %3287 = vmatpush3.bf16.msra.mxu0 %v3518_v33 }
  0x38   : > { %3304 = vmatprep.subr.bf16.mxu0 %v5047_v9 }
  0xb7   : > { %v688_v11 = vpop.xlane.xlu0 %687 }
  0xb8   : > { %v693_v12 = vmul.f32 0.03125, %v688_v11 }
  0xba   : > { %v695_v13 = vadd.f32 1e-05, %v693_v12 }
  0xbb   : > { %v691_v14 = vpop.xlane.xlu0 %690 }
  0xbc   : > { %3528 = vrsqrt.f32 %v695_v13  ;;  %v694_v15 = vmul.f32 0.03125, %v691_v14 }
  0xbe   : > { %v696_v16 = vadd.f32 1e-05, %v694_v15 }
  0xc0   : > { %3530 = vrsqrt.f32 %v696_v16 }
  0xc6   : > { %v3529_v17 = vpop.eup %3528 }
  0xc7   : > { %v699_v18 = vmul.f32 %v3529_v17, %v681_v2 }
  0xc9   : > { %v708_v22 = vmul.f32 %v3026_v20, %v699_v18 }
  0xca   : > { %v3531_v19 = vpop.eup %3530 }
  0xcb   : > { %v700_v21 = vmul.f32 %v3531_v19, %v682_v3 }
  0xcd   : > { %v709_v23 = vmul.f32 %v3026_v20, %v700_v21 }
  0xcf   : > { %v710_v25 = vpack.c.bf16 %v709_v23, %v708_v22 }
  0xd1   : > { %3269 = vmatmul.mubr.msk.bf16.vlgmr.msra.gmra.mrb[0].mxu1 %vm685_vm1, %v710_v25 }
  0xd2   : > { %3273 = vmatpush3.bf16.msra.mxu1 %v3510_v24  ;;  %3276 = vmatprep.mubr.msk.bf16.mxu1 %vm3629_vm2, %v5047_v9 }
  0xd3   : > { %3274 = vmatprep.subr.bf16.mxu1 %v5047_v9 }
  0xd6   : > { %3275 = vmatpush3.bf16.msra.mxu1 %v3511_v26 }
  0xd7   : > { %3292 = vmatprep.subr.bf16.mxu1 %v5047_v9 }
  0xd9   : > { %3277 = vmatmul.mubr.msk.bf16.vlgmr.msra.gmra.mrb[4].mxu1 %vm685_vm1, %v710_v25 }
  0xda   : > { %3300 = vmatprep.mubr.msk.bf16.mxu1 %vm3629_vm2, %v5047_v9  ;;  %3293 = vmatpush3.bf16.msra.mxu1 %v3513_v28 }
  0xdb   : > { %3294 = vmatprep.subr.bf16.mxu1 %v5047_v9 }
  0xde   : > { %3295 = vmatpush3.bf16.msra.mxu1 %v3515_v30 }
  0xdf   : > { %3296 = vmatprep.subr.bf16.mxu1 %v5047_v9 }
  0xe2   : > { %3297 = vmatpush3.bf16.msra.mxu1 %v3517_v32  ;;  %v1180_v32 = vld [vmem:[%s5108_s16 + $0x40] sm:$0xff] }
  0xe3   : > { %3298 = vmatprep.subr.bf16.mxu1 %v5047_v9  ;;  %v3330_v38 = vpack.c.bf16 %v1180_v32, %v1172_v31 }
  0xe6   : > { %3299 = vmatpush3.bf16.msra.mxu1 %v3519_v34 }
  0xe7   : > { %3329 = vmatprep.subr.bf16.mxu1 %v3843_v37 }
 0x1a4   : > { %v764_v43 = vpop.f32.mrb[0].mxu1 }
 0x1a5   : > { %v839_v46 = vrot.slane %v764_v43, 2  ;;  %v854_v47 = vrot.slane %v764_v43, 4  ;;  %v869_v48 = vrot.slane %v764_v43, 6  ;;  %v3270_v50 = vpop.f32.mrb[1].mxu1  ;;  %v887_v14 = vmul.f32 %v886_v62, %v764_v43  ;;  %v3522_v43 = vld [vmem:[%s3771_s15 + $0x10] sm:$0xff]  }
 0x1a6   : > { %v767_v52 = vpop.f32.mrb[2].mxu1  ;;  %v1176_v50 = vld [vmem:[%s5108_s16 + $0x20] sm:$0xff] }
 0x1a7   : > { %v844_v54 = vsel %vm838_vm3, 0.0, %v839_v46  ;;  %v859_v55 = vsel %vm853_vm4, 0.0, %v854_v47  ;;  %v840_v56 = vrot.slane %v767_v52, 2  ;;  %v3271_v57 = vpop.f32.mrb[3].mxu1  ;;  %v855_v60 = vrot.slane %v767_v52, 4 }
 0x1a8   : > { %v849_v58 = vmul.f32 %v848_v44, %v844_v54  ;;  %v874_v61 = vsel %vm868_vm5, 0.0, %v869_v48  ;;  %v870_v0 = vrot.slane %v767_v52, 6  ;;  %v864_v2 = vmul.f32 %v863_v51, %v859_v55  ;;  %v1183_v54 = vld [vmem:[%s5108_s16 + $0x58] sm:$0xff]  ;;  %v1182_v57 = vld [vmem:[%s5108_s16 + $0x50] sm:$0xff] }
 0x1a9   : > { %v841_v63 = vsel %vm838_vm3, %v839_v46, %v840_v56  ;;  %v856_v4 = vsel %vm853_vm4, %v854_v47, %v855_v60  ;;  %v879_v7 = vmul.f32 %v878_v59, %v874_v61  ;;  %v888_v21 = vmul.f32 %v886_v62, %v767_v52  ;;  %v1185_v46 = vld [vmem:[%s5108_s16 + $0x68] sm:$0xff]  ;;  %v3523_v47 = vld [vmem:[%s3771_s15 + $0x18] sm:$0xff]   ;;  %v1174_v56 = vld [vmem:[%s5108_s16 + $0x10] sm:$0xff] }
 0x1aa   : > { %v851_v1 = vadd.f32 %v3033_v53, %v849_v58  ;;  %v850_v3 = vmul.f32 %v848_v44, %v841_v63  ;;  %v871_v5 = vsel %vm868_vm5, %v869_v48, %v870_v0  ;;  %v865_v10 = vmul.f32 %v863_v51, %v856_v4  ;;  %v1177_v44 = vld [vmem:[%s5108_s16 + $0x28] sm:$0xff]  ;;  %v1184_v51 = vld [vmem:[%s5108_s16 + $0x60] sm:$0xff]  ;;  %v1187_v58 = vld [vmem:[%s5108_s16 + $0x78] sm:$0xff] }
 0x1ab   : > { %v880_v16 = vmul.f32 %v878_v59, %v871_v5  ;;  %v3336_v48 = vpack.c.bf16 %v1185_v46, %v1177_v44  ;;  %v3912_v52 = vpack.c.bf16 %v1184_v51, %v1176_v50  ;;  %v3036_v59 = vld [vmem:[%s5114_s25] ss:$0 sm:$0xff]  ;;  %v3334_v60 = vpack.c.bf16 %v1182_v57, %v1174_v56 }
 0x1ac   : > { %v866_v6 = vadd.f32 %v864_v2, %v851_v1  ;;  %v852_v8 = vadd.f32 %v3033_v53, %v850_v3  ;;  %v3872_v11 = vpop.f32.mrb[4].mxu1  ;;  %v1175_v53 = vld [vmem:[%s5108_s16 + $0x18] sm:$0xff] }
 0x1ad   : > { %5110 = vst [vmem:[#allocation6_spill] sm:$0xff] %v3872_v11  ;;  %v3278_v12 = vpop.f32.mrb[5].mxu1  ;;  %v3332_v55 = vpack.c.bf16 %v1183_v54, %v1175_v53 }
 0x1ae   : > { %v881_v13 = vadd.f32 %v879_v7, %v866_v6  ;;  %v867_v15 = vadd.f32 %v865_v10, %v852_v8  ;;  %v3874_v17 = vpop.f32.mrb[6].mxu1  ;;  %v1178_v10 = vld [vmem:[%s5108_s16 + $0x30] sm:$0xff] }
 0x1af   : > { %5111 = vst [vmem:[#allocation7_spill] sm:$0xff] %v3874_v17  ;;  %v3279_v18 = vpop.f32.mrb[7].mxu1  ;;  %v1186_v12 = vld [vmem:[%s5108_s16 + $0x70] sm:$0xff] }
 0x1b0   : > { %v889_v19 = vadd.f32 %v887_v14, %v881_v13  ;;  %v882_v20 = vadd.f32 %v880_v16, %v867_v15  ;;  %v3342_v15 = vpack.c.bf16 %v1186_v12, %v1178_v10  ;;  %v2354_v10 = vld [vmem:[%s5115_s4 + $0x188] sm:$0xff]  ;;  %v2309_v12 = vld [vmem:[%s5115_s4 + $0x20] sm:$0xff] }
 0x1b2   : > { %v3034_v22 = vmul.f32 -1.442695, %v889_v19  ;;  %v890_v23 = vadd.f32 %v888_v21, %v882_v20 }
 0x1b4   : > { %3532 = vpow2.f32 %v3034_v22  ;;  %v3035_v24 = vmul.f32 -1.442695, %v890_v23 }
 0x1b6   : > { %3534 = vpow2.f32 %v3035_v24 }
 0x1be   : > { %v3533_v25 = vpop.eup %3532 }
 0x1bf   : > { %v897_v26 = vadd.f32 1.0, %v3533_v25 }
 0x1c0   : > { %v3535_v27 = vpop.eup %3534 }
 0x1c1   : > { %3536 = vrcp.f32 %v897_v26  ;;  %v898_v28 = vadd.f32 1.0, %v3535_v27 }
 0x1c3   : > { %3538 = vrcp.f32 %v898_v28 }
 0x1cb   : > { %v3537_v29 = vpop.eup %3536 }
 0x1cc   : > { %v3882_v33 = vmul.f32 %v3537_v29, %v889_v19 }
 0x1cd   : > { %v3539_v30 = vpop.eup %3538 }
 0x1ce   : > { %5112 = vst [vmem:[#allocation8_spill] sm:$0xff] %v3882_v33  ;;  %v3884_v34 = vmul.f32 %v3539_v30, %v890_v23 }
 0x1d0   : > { %5113 = vst [vmem:[#allocation9_spill] sm:$0xff] %v3884_v34  ;;  %v905_v36 = vpack.c.bf16 %v3884_v34, %v3882_v33 }
 0x1d2   : > { %3289 = vmatmul.mubr.msk.bf16.vlgmr.msra.gmra.mrb[0].mxu0 %vm945_vm6, %v905_v36  ;;  %3301 = vmatmul.mubr.msk.bf16.vlgmr.msra.gmra.mrb[8].mxu1 %vm945_vm6, %v905_v36 }
 0x1d3   : > { %3305 = vmatpush3.bf16.msra.mxu0 %v3520_v35  ;;  %3312 = vmatprep.mubr.msk.bf16.mxu0 %vm3629_vm2, %v5047_v9 }
 0x1d4   : > { %3306 = vmatprep.subr.bf16.mxu0 %v5047_v9  ;;  %3331 = vmatpush1.bf16.msra.mxu1 %v3330_v38 }
 0x1d5   : > { %1259 = vmatprep.mubr.f32.mxu1 %v5047_v9  ;;  %3333 = vmatprep.subr.bf16.mxu1 %v3332_v55 }
 0x1d7   : > { %3307 = vmatpush3.bf16.msra.mxu0 %v3521_v42 }
 0x1d8   : > { %3308 = vmatprep.subr.bf16.mxu0 %v5047_v9 }
 0x1db   : > { %3309 = vmatpush3.bf16.msra.mxu0 %v3522_v43 }
 0x1dc   : > { %3310 = vmatprep.subr.bf16.mxu0 %v5047_v9 }
 0x1df   : > { %3311 = vmatpush3.bf16.msra.mxu0 %v3523_v47 }
 0x1e0   : > { %3337 = vmatprep.subr.bf16.mxu0 %v3336_v48 }
 0x1e2   : > { %3313 = vmatmul.mubr.msk.bf16.vlgmr.msra.gmra.mrb[4].mxu0 %vm945_vm6, %v905_v36 }
 0x1e3   : > { %3339 = vmatpush1.bf16.msra.mxu0 %v3912_v52  ;;  %1413 = vmatprep.mubr.f32.mxu0 %v5047_v9 }
 0x1e4   : > { %3345 = vmatprep.subr.bf16.mxu0 %v3843_v37  ;;  %v1179_v37 = vld [vmem:[%s5108_s16 + $0x38] sm:$0xff] }
 0x1e5   : > { %v3340_v61 = vpack.c.bf16 %v1187_v58, %v1179_v37  ;;  %v2321_v37 = vld [vmem:[%s5115_s4 + $0x80] sm:$0xff]  ;;  %v2322_v58 = vld [vmem:[%s5115_s4 + $0x88] sm:$0xff] }
 0x2a5   : > { %v983_v62 = vpop.f32.mrb[0].mxu0  ;;  %v1092_v63 = vpop.f32.mrb[8].mxu1 }
 0x2a6   : > { %v3941_v0 = vadd.f32 %v3036_v59, %v983_v62  ;;  %v3290_v1 = vpop.f32.mrb[1].mxu0  ;;  %v3302_v2 = vpop.f32.mrb[9].mxu1  ;;  %3052 = vmatmul.mubr.msk.f32.vlgmr.msra.gmra.mrb[12].mxu1 %vm1188_vm7, %v1092_v63  ;;  %3056 = vmatmul.mubr.msk.f32.vlgmr.msra.gmra.mrb[8].mxu0 %vm1188_vm7, %v1092_v63  ;;  %v2323_v62 = vld [vmem:[%s5115_s4 + $0x90] sm:$0xff] }
 0x2a7   : > { %3335 = vmatpush1.bf16.msra.mxu1 %v3334_v60  ;;  %v986_v3 = vpop.f32.mrb[2].mxu0  ;;  %v1095_v4 = vpop.f32.mrb[10].mxu1  ;;  %1265 = vmatprep.mubr.f32.mxu1 %v5047_v9  ;;  %v2307_v2 = vld [vmem:[%s5115_s4 + $0x10] sm:$0xff] }
 0x2a8   : > { %v996_v5 = vand.u32 2147483647, %v3941_v0  ;;  %v3947_v6 = vadd.f32 %v3036_v59, %v986_v3  ;;  %v3291_v7 = vpop.f32.mrb[3].mxu0  ;;  %v3303_v8 = vpop.f32.mrb[11].mxu1  ;;  %1419 = vmatprep.mubr.f32.mxu0 %v5047_v9  ;;  %3341 = vmatprep.subr.bf16.mxu1 %v3340_v61  ;;  %v990_v44 = vmax.f32 %v3941_v0, 0.0  ;;  %vm992_vm10 = vcmp.ne.f32.partialorder %v3941_v0, %v3941_v0  ;;  %v2305_v59 = vld [vmem:[%s5115_s4] sm:$0xff] }
 0x2a9   : > { %3347 = vmatpush1.bf16.msra.mxu0 %v3330_v38  ;;  %v2308_v3 = vld [vmem:[%s5115_s4 + $0x18] sm:$0xff]  ;;  %v2353_v7 = vld [vmem:[%s5115_s4 + $0x180] sm:$0xff] }
 0x2aa   : > { %v998_v13 = vsub.f32 0.0, %v996_v5  ;;  %v997_v14 = vand.u32 2147483647, %v3947_v6  ;;  %3053 = vmatmul.mubr.msk.f32.gmra.mrb[14].mxu1 %vm1188_vm7, %v1095_v4  ;;  %3057 = vmatmul.mubr.msk.f32.gmra.mrb[10].mxu0 %vm1188_vm7, %v1095_v4  ;;  %v991_v51 = vmax.f32 %v3947_v6, 0.0  ;;  %vm993_vm11 = vcmp.ne.f32.partialorder %v3947_v6, %v3947_v6  ;;  %v2325_v5 = vld [vmem:[%s5115_s4 + $0xa0] sm:$0xff] }
 0x2ab   : > { %1336 = vmatprep.mubr.f32.mxu1 %v5047_v9  ;;  %1573 = vmatprep.mubr.f32.mxu0 %v5047_v9 }
 0x2ac   : > { %v1000_v16 = vmul.f32 1.442695, %v998_v13  ;;  %v999_v18 = vsub.f32 0.0, %v997_v14  ;;  %3353 = vmatprep.subr.bf16.mxu0 %v3336_v48  ;;  %v2310_v13 = vld [vmem:[%s5115_s4 + $0x28] sm:$0xff]  ;;  %v3392_v14 = vpack.c.bf16 %v2354_v10, %v2353_v7 }
 0x2ad   : > { %v2362_v7 = vld [vmem:[%s5115_s4 + $0x1c8] sm:$0xff] }
 0x2ae   : > { %3540 = vpow2.f32 %v1000_v16  ;;  %v1002_v19 = vmul.f32 1.442695, %v999_v18  ;;  %3054 = vmatmul.mubr.msk.f32.vlgmr.msra.gmra.mrb[16].mxu1 %vm1188_vm7, %v1092_v63  ;;  %v2337_v16 = vld [vmem:[%s5115_s4 + $0x100] sm:$0xff]  ;;  %v2338_v18 = vld [vmem:[%s5115_s4 + $0x108] sm:$0xff] }
 0x2af   : > { %1342 = vmatprep.mubr.f32.mxu1 %v5047_v9  ;;  %3343 = vmatpush1.bf16.msra.mxu1 %v3342_v15  ;;  %v2318_v10 = vld [vmem:[%s5115_s4 + $0x68] sm:$0xff] }
 0x2b0   : > { %3542 = vpow2.f32 %v1002_v19  ;;  %3349 = vmatprep.subr.bf16.mxu1 %v3332_v55  ;;  %v2327_v19 = vld [vmem:[%s5115_s4 + $0xb0] sm:$0xff] }
 0x2b2   : > { %3055 = vmatmul.mubr.msk.f32.gmra.mrb[18].mxu1 %vm1188_vm7, %v1095_v4 }
 0x2b3   : > { %1490 = vmatprep.mubr.f32.mxu1 %v5047_v9 }
 0x2b5   : > { %v1165_v20 = vpop.f32.mrb[4].mxu0 }
 0x2b6   : > { %v3314_v21 = vpop.f32.mrb[5].mxu0  ;;  %3060 = vmatmul.mubr.msk.f32.vlgmr.msra.gmra.mrb[12].mxu0 %vm1188_vm7, %v1165_v20  ;;  %3058 = vmatmul.mubr.msk.f32.vlgmr.msra.gmra.mrb[20].mxu1 %vm1188_vm7, %v1092_v63  ;;  %v2324_v63 = vld [vmem:[%s5115_s4 + $0x98] sm:$0xff] }
 0x2b7   : > { %v1168_v22 = vpop.f32.mrb[6].mxu0  ;;  %1579 = vmatprep.mubr.f32.mxu0 %v5047_v9  ;;  %1496 = vmatprep.mubr.f32.mxu1 %v5047_v9  ;;  %v3364_v1 = vpack.c.bf16 %v2324_v63, %v2323_v62  ;;  %v2328_v21 = vld [vmem:[%s5115_s4 + $0xb8] sm:$0xff] }
 0x2b8   : > { %v3541_v23 = vpop.eup %3540  ;;  %v3315_v24 = vpop.f32.mrb[7].mxu0  ;;  %3355 = vmatpush1.bf16.msra.mxu0 %v3912_v52  ;;  %3351 = vmatpush1.bf16.msra.mxu1 %v3334_v60  ;;  %v3360_v60 = vpack.c.bf16 %v2322_v58, %v2321_v37  ;;  %v2359_v37 = vld [vmem:[%s5115_s4 + $0x1b0] sm:$0xff] }
 0x2b9   : > { %3357 = vmatprep.subr.bf16.mxu1 %v3340_v61  ;;  %v1004_v25 = vadd.f32 1.0, %v3541_v23  ;;  %v1007_v28 = vmul.f32 -0.5, %v3541_v23  ;;  %v1010_v31 = vand.u32 2147483647, %v3541_v23  ;;  %v2306_v61 = vld [vmem:[%s5115_s4 + $0x8] sm:$0xff]  ;;  %v3372_v24 = vpack.c.bf16 %v2328_v21, %v2327_v19  ;;  %v2336_v19 = vld [vmem:[%s5115_s4 + $0xf8] sm:$0xff] }
 0x2ba   : > { %v3543_v26 = vpop.eup %3542  ;;  %3061 = vmatmul.mubr.msk.f32.gmra.mrb[14].mxu0 %vm1188_vm7, %v1168_v22  ;;  %3059 = vmatmul.mubr.msk.f32.gmra.mrb[22].mxu1 %vm1188_vm7, %v1095_v4  ;;  %v3366_v4 = vpack.c.bf16 %v2308_v3, %v2307_v2  ;;  %v2333_v3 = vld [vmem:[%s5115_s4 + $0xe0] sm:$0xff] }
 0x2bb   : > { %1727 = vmatprep.mubr.f32.mxu0 %v5047_v9  ;;  %1650 = vmatprep.mubr.f32.mxu1 %v5047_v9  ;;  %3544 = vlog2.f32 %v1004_v25  ;;  %v1013_v27 = vadd.f32 1.0, %v3543_v26  ;;  %v1016_v29 = vmul.f32 -0.5, %v3543_v26  ;;  %v1008_v30 = vadd.f32 1.0, %v1007_v28  ;;  %v2339_v28 = vld [vmem:[%s5115_s4 + $0x110] sm:$0xff] }
 0x2bc   : > { %v1019_v36 = vand.u32 2147483647, %v3543_v26  ;;  %vm1011_vm8 = vcmp.lt.f32.partialorder %v1010_v31, 0.0004427343  ;;  %3361 = vmatprep.subr.bf16.mxu0 %v3360_v60  ;;  %v2315_v60 = vld [vmem:[%s5115_s4 + $0x50] sm:$0xff] }
 0x2bd   : > { %3546 = vlog2.f32 %v1013_v27  ;;  %v1017_v32 = vadd.f32 1.0, %v1016_v29  ;;  %v1009_v42 = vmul.f32 %v3541_v23, %v1008_v30  ;;  %v2356_v23 = vld [vmem:[%s5115_s4 + $0x198] sm:$0xff] }
 0x2be   : > { %3064 = vmatmul.mubr.msk.f32.vlgmr.msra.gmra.mrb[16].mxu0 %vm1188_vm7, %v1165_v20  ;;  %3062 = vmatmul.mubr.msk.f32.vlgmr.msra.gmra.mrb[24].mxu1 %vm1188_vm7, %v1165_v20  ;;  %vm1020_vm9 = vcmp.lt.f32.partialorder %v1019_v36, 0.0004427343  ;;  %v2312_v27 = vld [vmem:[%s5115_s4 + $0x38] sm:$0xff]  ;;  %v2357_v36 = vld [vmem:[%s5115_s4 + $0x1a0] sm:$0xff] }
 0x2bf   : > { %1733 = vmatprep.mubr.f32.mxu0 %v5047_v9  ;;  %1656 = vmatprep.mubr.f32.mxu1 %v5047_v9  ;;  %v1018_v48 = vmul.f32 %v3543_v26, %v1017_v32  ;;  %v2311_v26 = vld [vmem:[%s5115_s4 + $0x30] sm:$0xff]  ;;  %v2340_v30 = vld [vmem:[%s5115_s4 + $0x118] sm:$0xff]  ;;  %v2329_v32 = vld [vmem:[%s5115_s4 + $0xc0] sm:$0xff] }
 0x2c0   : > { %3359 = vmatpush1.bf16.msra.mxu1 %v3342_v15  ;;  %v3370_v15 = vpack.c.bf16 %v2310_v13, %v2309_v12  ;;  %v3374_v29 = vpack.c.bf16 %v2312_v27, %v2311_v26  ;;  %v3398_v31 = vpack.c.bf16 %v2340_v30, %v2339_v28  ;;  %v2347_v27 = vld [vmem:[%s5115_s4 + $0x150] sm:$0xff]  ;;  %v2348_v28 = vld [vmem:[%s5115_s4 + $0x158] sm:$0xff]  ;;  %v2365_v30 = vld [vmem:[%s5115_s4 + $0x1e0] sm:$0xff] }
 0x2c1   : > { %3393 = vmatprep.subr.bf16.mxu1 %v3392_v14  ;;  %v2345_v14 = vld [vmem:[%s5115_s4 + $0x140] sm:$0xff] }
 0x2c2   : > { %3065 = vmatmul.mubr.msk.f32.gmra.mrb[18].mxu0 %vm1188_vm7, %v1168_v22  ;;  %3063 = vmatmul.mubr.msk.f32.gmra.mrb[26].mxu1 %vm1188_vm7, %v1168_v22 }
 0x2c3   : > { %1804 = vmatprep.mubr.f32.mxu1 %v5047_v9 }
 0x2c5   : > { %v3545_v35 = vpop.eup %3544 }
 0x2c6   : > { %3066 = vmatmul.mubr.msk.f32.vlgmr.msra.gmra.mrb[28].mxu1 %vm1188_vm7, %v1165_v20  ;;  %v1006_v38 = vmul.f32 0.6931472, %v3545_v35  ;;  %v3394_v20 = vpack.c.bf16 %v2338_v18, %v2337_v16  ;;  %v2330_v35 = vld [vmem:[%s5115_s4 + $0xc8] sm:$0xff]  ;;  %v2335_v18 = vld [vmem:[%s5115_s4 + $0xf0] sm:$0xff] }
 0x2c7   : > { %v3547_v43 = vpop.eup %3546  ;;  %1810 = vmatprep.mubr.f32.mxu1 %v5047_v9  ;;  %v3388_v21 = vpack.c.bf16 %v2336_v19, %v2335_v18 }
 0x2c8   : > { %v1012_v46 = vsel %vm1011_vm8, %v1009_v42, %v1006_v38  ;;  %v1015_v47 = vmul.f32 0.6931472, %v3547_v43  ;;  %3395 = vmatpush3.bf16.msra.mxu1 %v3394_v20  ;;  %v3376_v38 = vpack.c.bf16 %v2330_v35, %v2329_v32  ;;  %v2358_v42 = vld [vmem:[%s5115_s4 + $0x1a8] sm:$0xff]  ;;  %v2313_v43 = vld [vmem:[%s5115_s4 + $0x40] sm:$0xff]  ;;  %v2363_v20 = vld [vmem:[%s5115_s4 + $0x1d0] sm:$0xff] }
 0x2c9   : > { %v1022_v50 = vadd.f32 %v1012_v46, %v990_v44  ;;  %v2314_v44 = vld [vmem:[%s5115_s4 + $0x48] sm:$0xff]  ;;  %v3400_v46 = vpack.c.bf16 %v2358_v42, %v2357_v36  ;;  %v2385_v32 = vld [vmem:[%s5115_s4 + $0x280] sm:$0xff] }
 0x2ca   : > { %3067 = vmatmul.mubr.msk.f32.gmra.mrb[30].mxu1 %vm1188_vm7, %v1168_v22  ;;  %v1021_v52 = vsel %vm1020_vm9, %v1018_v48, %v1015_v47  ;;  %v2355_v22 = vld [vmem:[%s5115_s4 + $0x190] sm:$0xff]  ;;  %v3378_v47 = vpack.c.bf16 %v2314_v44, %v2313_v43  ;;  %v2341_v48 = vld [vmem:[%s5115_s4 + $0x120] sm:$0xff]  ;;  %v2386_v36 = vld [vmem:[%s5115_s4 + $0x288] sm:$0xff] }
 0x2cb   : > { %v3989_v53 = vsel %vm992_vm10, %v3941_v0, %v1022_v50  ;;  %v1023_v54 = vadd.f32 %v1021_v52, %v991_v51  ;;  %v3362_v0 = vpack.c.bf16 %v2306_v61, %v2305_v59  ;;  %v3396_v25 = vpack.c.bf16 %v2356_v23, %v2355_v22  ;;  %v2342_v50 = vld [vmem:[%s5115_s4 + $0x128] sm:$0xff]  ;;  %v2331_v52 = vld [vmem:[%s5115_s4 + $0xd0] sm:$0xff]  ;;  %v2360_v59 = vld [vmem:[%s5115_s4 + $0x1b8] sm:$0xff] }
 0x2cc   : > { %1819 = vrot.lane.b32.xlu1 %v3989_v53, %s3630_s17  ;;  %v4000_v56 = vmul.f32 %v3989_v53, %v3882_v33  ;;  %v3402_v51 = vpack.c.bf16 %v2342_v50, %v2341_v48  ;;  %v2316_v61 = vld [vmem:[%s5115_s4 + $0x58] sm:$0xff]  ;;  %v3404_v62 = vpack.c.bf16 %v2360_v59, %v2359_v37  ;;  %v2319_v23 = vld [vmem:[%s5115_s4 + $0x70] sm:$0xff]  ;;  %v2349_v42 = vld [vmem:[%s5115_s4 + $0x160] sm:$0xff] }
 0x2cd   : > { %v3995_v55 = vsel %vm993_vm11, %v3947_v6, %v1023_v54  ;;  %3363 = vmatpush3.bf16.msra.mxu0 %v3362_v0  ;;  %v2326_v6 = vld [vmem:[%s5115_s4 + $0xa8] sm:$0xff]  ;;  %3397 = vmatprep.subr.bf16.mxu1 %v3396_v25  ;;  %v2332_v54 = vld [vmem:[%s5115_s4 + $0xd8] sm:$0xff]  ;;  %v3382_v63 = vpack.c.bf16 %v2316_v61, %v2315_v60  ;;  %v2343_v0 = vld [vmem:[%s5115_s4 + $0x130] sm:$0xff]  ;;  %v1847_v60 = vsub.s32 4, %v3846_v39 }
 0x2ce   : > { %1821 = vrot.lane.b32.xlu0 %v3995_v55, %s3630_s17  ;;  %v4005_v57 = vmul.f32 %v3995_v55, %v3884_v34  ;;  %3365 = vmatprep.subr.bf16.mxu0 %v3364_v1  ;;  %v3368_v8 = vpack.c.bf16 %v2326_v6, %v2325_v5  ;;  %v3380_v58 = vpack.c.bf16 %v2332_v54, %v2331_v52  ;;  %v2344_v1 = vld [vmem:[%s5115_s4 + $0x138] sm:$0xff]  ;;  %v2361_v5 = vld [vmem:[%s5115_s4 + $0x1c0] sm:$0xff]  ;;  %v2350_v43 = vld [vmem:[%s5115_s4 + $0x168] sm:$0xff] }
 0x2cf   : > { %3399 = vmatpush3.bf16.msra.mxu1 %v3398_v31  ;;  %v3406_v2 = vpack.c.bf16 %v2344_v1, %v2343_v0  ;;  %v3408_v12 = vpack.c.bf16 %v2362_v7, %v2361_v5  ;;  %v2364_v22 = vld [vmem:[%s5115_s4 + $0x1d8] sm:$0xff]  ;;  %v2366_v31 = vld [vmem:[%s5115_s4 + $0x1e8] sm:$0xff]  ;;  %v3418_v44 = vpack.c.bf16 %v2350_v43, %v2349_v42  ;;  %v2351_v50 = vld [vmem:[%s5115_s4 + $0x170] sm:$0xff]  ;;  %v1855_v5 = vsub.s32 6, %v3846_v39 }
 0x2d0   : > { %1921 = vrot.lane.b32.xlu1 %v4000_v56, %s3630_s17  ;;  %3401 = vmatprep.subr.bf16.mxu1 %v3400_v46  ;;  %v3412_v25 = vpack.c.bf16 %v2364_v22, %v2363_v20  ;;  %v3416_v35 = vpack.c.bf16 %v2366_v31, %v2365_v30  ;;  %v2367_v46 = vld [vmem:[%s5115_s4 + $0x1f0] sm:$0xff]  ;;  %v2417_v54 = vld [vmem:[%s5115_s4 + $0x380] sm:$0xff]  ;;  %v2418_v37 = vld [vmem:[%s5115_s4 + $0x388] sm:$0xff]  ;;  %v1859_v7 = vsub.s32 7, %v3846_v39 }
 0x2d1   : > { %3367 = vmatpush3.bf16.msra.mxu0 %v3366_v4  ;;  %v2334_v4 = vld [vmem:[%s5115_s4 + $0xe8] sm:$0xff]  ;;  %v1827_v59 = vld [vmem:[%s3781_s2] sm:$0xff]  ;;  %v4258_v20 = vld [vmem:[%s5115_s4 + $0x298] sm:$0xff] }
 0x2d2   : > { %3369 = vmatprep.subr.bf16.mxu0 %v3368_v8  ;;  %v3384_v6 = vpack.c.bf16 %v2334_v4, %v2333_v3  ;;  %v2317_v8 = vld [vmem:[%s5115_s4 + $0x60] sm:$0xff]  ;;  %v4219_v0 = vrot.slane %v1827_v59, %v862_v41  ;;  %v1840_v41 = vrot.slane %v1827_v59, %v877_v45  ;;  %v4248_v45 = vld [vmem:[%s5115_s4 + $0x208] sm:$0xff]  ;;  %v4268_v22 = vld [vmem:[%s5115_s4 + $0x218] sm:$0xff] }
 0x2d3   : > { %3403 = vmatpush3.bf16.msra.mxu1 %v3402_v51  ;;  %v3386_v13 = vpack.c.bf16 %v2318_v10, %v2317_v8  ;;  %v2352_v51 = vld [vmem:[%s5115_s4 + $0x178] sm:$0xff]  ;;  %v4299_v30 = vld [vmem:[%s5115_s4 + $0x308] sm:$0xff] }
 0x2d4   : > { %1923 = vrot.lane.b32.xlu1 %v4005_v57, %s3630_s17  ;;  %3405 = vmatprep.subr.bf16.mxu1 %v3404_v62  ;;  %v3422_v52 = vpack.c.bf16 %v2352_v51, %v2351_v50  ;;  %v1851_v62 = vsub.s32 5, %v3846_v39  ;;  %v4253_v39 = vld [vmem:[%s5115_s4 + $0x290] sm:$0xff]  ;;  %5117 = vst [vmem:[#allocation11_spill] sm:$0xff] %v4299_v30 }
 0x2d5   : > { %3371 = vmatpush3.bf16.msra.mxu0 %v3370_v15  ;;  %v2346_v15 = vld [vmem:[%s5115_s4 + $0x148] sm:$0xff] }
 0x2d6   : > { %3373 = vmatprep.subr.bf16.mxu0 %v3372_v24  ;;  %v3410_v16 = vpack.c.bf16 %v2346_v15, %v2345_v14  ;;  %v2320_v24 = vld [vmem:[%s5115_s4 + $0x78] sm:$0xff]  ;;  %v4225_v3 = vrot.slane %v1827_v59, %v1851_v62  ;;  %v4238_v14 = vrot.slane %v1827_v59, %v1859_v7  ;;  %v4460_v7 = vld [vmem:[%s5115_s4 + $0x2e0] sm:$0xff] }
 0x2d7   : > { %3407 = vmatpush3.bf16.msra.mxu1 %v3406_v2  ;;  %v3390_v26 = vpack.c.bf16 %v2320_v24, %v2319_v23  ;;  %v4223_v2 = vrot.slane %v1827_v59, %v1847_v60  ;;  %v4273_v24 = vld [vmem:[%s5115_s4 + $0x2a0] sm:$0xff]  ;;  %v4356_v62 = vld [vmem:[%s5115_s4 + $0x318] sm:$0xff]  ;;  %5141 = vst [vmem:[#allocation35_spill] sm:$0xff] %v4460_v7 }
 0x2d8   : > { %3409 = vmatprep.subr.bf16.mxu1 %v3408_v12  ;;  %v4236_v12 = vrot.slane %v1827_v59, %v1855_v5  ;;  %5124 = vst [vmem:[#allocation18_spill] sm:$0xff] %v4356_v62 }
 0x2d9   : > { %3375 = vmatpush3.bf16.msra.mxu0 %v3374_v29  ;;  %v3414_v29 = vpack.c.bf16 %v2348_v28, %v2347_v27  ;;  %v4289_v28 = vld [vmem:[%s5115_s4 + $0x228] sm:$0xff] }
 0x2da   : > { %3377 = vmatprep.subr.bf16.mxu0 %v3376_v38  ;;  %v3424_v38 = vpack.c.bf16 %v2386_v36, %v2385_v32  ;;  %v4312_v36 = vld [vmem:[%s5115_s4 + $0x2b8] sm:$0xff] }
 0x2db   : > { %3411 = vmatpush3.bf16.msra.mxu1 %v3410_v16  ;;  %v4243_v16 = vld [vmem:[%s5115_s4 + $0x200] sm:$0xff] }
 0x2dc   : > { %3413 = vmatprep.subr.bf16.mxu1 %v3412_v25  ;;  %v4278_v25 = vld [vmem:[%s5115_s4 + $0x2a8] sm:$0xff] }
 0x2dd   : > { %3379 = vmatpush3.bf16.msra.mxu0 %v3378_v47  ;;  %v2368_v47 = vld [vmem:[%s5115_s4 + $0x1f8] sm:$0xff] }
 0x2de   : > { %3381 = vmatprep.subr.bf16.mxu0 %v3380_v58  ;;  %v3420_v48 = vpack.c.bf16 %v2368_v47, %v2367_v46  ;;  %v3456_v58 = vpack.c.bf16 %v2418_v37, %v2417_v54  ;;  %v4331_v46 = vld [vmem:[%s5115_s4 + $0x230] sm:$0xff]  ;;  %v4336_v47 = vld [vmem:[%s5115_s4 + $0x238] sm:$0xff] }
 0x2df   : > { %3415 = vmatpush3.bf16.msra.mxu1 %v3414_v29  ;;  %v4294_v29 = vld [vmem:[%s5115_s4 + $0x300] sm:$0xff]  ;;  %5121 = vst [vmem:[#allocation15_spill] sm:$0xff] %v4331_v46  ;;  %5122 = vst [vmem:[#allocation16_spill] sm:$0xff] %v4336_v47  ;;  %v4347_v37 = vld [vmem:[%s5115_s4 + $0x310] sm:$0xff] }
 0x2e0   : > { %3417 = vmatprep.subr.bf16.mxu1 %v3416_v35  ;;  %5116 = vst [vmem:[#allocation10_spill] sm:$0xff] %v4294_v29  ;;  %v4307_v35 = vld [vmem:[%s5115_s4 + $0x2b0] sm:$0xff]  ;;  %5123 = vst [vmem:[#allocation17_spill] sm:$0xff] %v4347_v37 }
 0x2e1   : > { %3383 = vmatpush3.bf16.msra.mxu0 %v3382_v63  ;;  %v1832_v63 = vrot.slane %v1827_v59, %v847_v40  ;;  %5118 = vst [vmem:[#allocation12_spill] sm:$0xff] %v4307_v35 }
 0x2e2   : > { %3385 = vmatprep.subr.bf16.mxu0 %v3384_v6 }
 0x2e3   : > { %3419 = vmatpush3.bf16.msra.mxu1 %v3418_v44  ;;  %v4326_v44 = vld [vmem:[%s5115_s4 + $0x398] sm:$0xff] }
 0x2e4   : > { %3421 = vmatprep.subr.bf16.mxu1 %v3420_v48  ;;  %5120 = vst [vmem:[#allocation14_spill] sm:$0xff] %v4326_v44 }
 0x2e5   : > { %3387 = vmatpush3.bf16.msra.mxu0 %v3386_v13 }
 0x2e6   : > { %3389 = vmatprep.subr.bf16.mxu0 %v3388_v21  ;;  %v4263_v21 = vld [vmem:[%s5115_s4 + $0x210] sm:$0xff] }
 0x2e7   : > { %3423 = vmatpush3.bf16.msra.mxu1 %v3422_v52 }
 0x2e8   : > { %3457 = vmatprep.subr.bf16.mxu1 %v3456_v58 }
 0x2e9   : > { %3391 = vmatpush3.bf16.msra.mxu0 %v3390_v26  ;;  %v4283_v26 = vld [vmem:[%s5115_s4 + $0x220] sm:$0xff] }
 0x2ea   : > { %3425 = vmatprep.subr.bf16.mxu0 %v3424_v38  ;;  %v4317_v38 = vld [vmem:[%s5115_s4 + $0x390] sm:$0xff] }
 0x2eb   : > { %5119 = vst [vmem:[#allocation13_spill] sm:$0xff] %v4317_v38 }
 0x33e   : > { %v1820_v61 = vpop.permute.xlu1 %1819 }
 0x33f   : > { %v1825_v1 = vsel %vm945_vm6, %v3989_v53, %v1820_v61  ;;  %v1844_v53 = vrot.slane %v1827_v59, %v885_v49 }
 0x340   : > { %v1869_v4 = vmul.f32 %v1832_v63, %v1825_v1  ;;  %v1870_v6 = vmul.f32 %v4219_v0, %v1825_v1  ;;  %v1873_v40 = vmul.f32 %v4223_v2, %v1825_v1  ;;  %v1874_v8 = vmul.f32 %v4225_v3, %v1825_v1  ;;  %v1822_v19 = vpop.permute.xlu0 %1821 }
 0x341   : > { %v1871_v49 = vmul.f32 %v1840_v41, %v1825_v1  ;;  %v1872_v23 = vmul.f32 %v1844_v53, %v1825_v1  ;;  %v1875_v27 = vmul.f32 %v4236_v12, %v1825_v1  ;;  %v1876_v31 = vmul.f32 %v4238_v14, %v1825_v1  ;;  %v4361_v1 = vld [vmem:[%s5115_s4 + $0x2c0] sm:$0xff] }
 0x342   : > { %v1885_v10 = vmul.f32 1.442695, %v1869_v4  ;;  %v1887_v13 = vmul.f32 1.442695, %v1870_v6  ;;  %v1893_v15 = vmul.f32 1.442695, %v1873_v40  ;;  %v1826_v32 = vsel %vm945_vm6, %v3995_v55, %v1822_v19  ;;  %v1922_v50 = vpop.permute.xlu1 %1921 }
 0x343   : > { %v1895_v18 = vmul.f32 1.442695, %v1874_v8  ;;  %v1889_v42 = vmul.f32 1.442695, %v1871_v49  ;;  %v1891_v48 = vmul.f32 1.442695, %v1872_v23  ;;  %v1877_v59 = vmul.f32 %v1832_v63, %v1826_v32 }
 0x344   : > { %3548 = vpow2.f32 %v1885_v10  ;;  %v1897_v58 = vmul.f32 1.442695, %v1875_v27  ;;  %5125 = vst [vmem:[#allocation19_spill] sm:$0xff] %v4361_v1  ;;  %v4366_v63 = vld [vmem:[%s5115_s4 + $0x2c8] sm:$0xff]  ;;  %v1899_v4 = vmul.f32 1.442695, %v1876_v31  ;;  %v1878_v5 = vmul.f32 %v4219_v0, %v1826_v32 }
 0x345   : > { %3550 = vpow2.f32 %v1887_v13  ;;  %5126 = vst [vmem:[#allocation20_spill] sm:$0xff] %v4366_v63  ;;  %v4376_v40 = vld [vmem:[%s5115_s4 + $0x3a0] sm:$0xff]  ;;  %v4381_v8 = vld [vmem:[%s5115_s4 + $0x3a8] sm:$0xff]  ;;  %v1879_v10 = vmul.f32 %v1840_v41, %v1826_v32  ;;  %v1880_v13 = vmul.f32 %v1844_v53, %v1826_v32  ;;  %v1882_v41 = vmul.f32 %v4225_v3, %v1826_v32  ;;  %v4410_v23 = vld [vmem:[%s5115_s4 + $0x2d0] sm:$0xff] }
 0x346   : > { %3552 = vpow2.f32 %v1893_v15  ;;  %5127 = vst [vmem:[#allocation21_spill] sm:$0xff] %v4376_v40  ;;  %5128 = vst [vmem:[#allocation22_spill] sm:$0xff] %v4381_v8  ;;  %v4386_v0 = vld [vmem:[%s5115_s4 + $0x240] sm:$0xff]  ;;  %v1881_v15 = vmul.f32 %v4223_v2, %v1826_v32  ;;  %v4392_v49 = vld [vmem:[%s5115_s4 + $0x248] sm:$0xff]  ;;  %v1883_v2 = vmul.f32 %v4236_v12, %v1826_v32  ;;  %v1884_v53 = vmul.f32 %v4238_v14, %v1826_v32  ;;  %v1924_v14 = vpop.permute.xlu1 %1923 }
 0x347   : > { %3554 = vpow2.f32 %v1895_v18  ;;  %5129 = vst [vmem:[#allocation23_spill] sm:$0xff] %v4386_v0  ;;  %5130 = vst [vmem:[#allocation24_spill] sm:$0xff] %v4392_v49  ;;  %v4397_v18 = vld [vmem:[%s5115_s4 + $0x320] sm:$0xff]  ;;  %v4402_v19 = vld [vmem:[%s5115_s4 + $0x328] sm:$0xff]  ;;  %v1901_v12 = vmul.f32 1.442695, %v1877_v59  ;;  %v4475_v34 = vsel %vm945_vm6, %v4000_v56, %v1922_v50 }
 0x348   : > { %3556 = vpow2.f32 %v1889_v42  ;;  %5131 = vst [vmem:[#allocation25_spill] sm:$0xff] %v4397_v18  ;;  %5132 = vst [vmem:[#allocation26_spill] sm:$0xff] %v4402_v19  ;;  %v4415_v27 = vld [vmem:[%s5115_s4 + $0x2d8] sm:$0xff]  ;;  %v4420_v31 = vld [vmem:[%s5115_s4 + $0x3b0] sm:$0xff]  ;;  %v1903_v9 = vmul.f32 1.442695, %v1878_v5 }
 0x349   : > { %3558 = vpow2.f32 %v1891_v48  ;;  %5133 = vst [vmem:[#allocation27_spill] sm:$0xff] %v4410_v23  ;;  %5134 = vst [vmem:[#allocation28_spill] sm:$0xff] %v4415_v27  ;;  %v4425_v3 = vld [vmem:[%s5115_s4 + $0x3b8] sm:$0xff]  ;;  %v4434_v42 = vld [vmem:[%s5115_s4 + $0x250] sm:$0xff]  ;;  %v1905_v6 = vmul.f32 1.442695, %v1879_v10  ;;  %v4481_v10 = vsel %vm945_vm6, %v4005_v57, %v1924_v14 }
 0x34a   : > { %5135 = vst [vmem:[#allocation29_spill] sm:$0xff] %v4420_v31  ;;  %5136 = vst [vmem:[#allocation30_spill] sm:$0xff] %v4425_v3  ;;  %3560 = vpow2.f32 %v1897_v58  ;;  %v4439_v48 = vld [vmem:[%s5115_s4 + $0x258] sm:$0xff]  ;;  %v4444_v58 = vld [vmem:[%s5115_s4 + $0x330] sm:$0xff]  ;;  %v1907_v61 = vmul.f32 1.442695, %v1880_v13 }
 0x34b   : > { %5137 = vst [vmem:[#allocation31_spill] sm:$0xff] %v4434_v42  ;;  %5138 = vst [vmem:[#allocation32_spill] sm:$0xff] %v4439_v48  ;;  %3562 = vpow2.f32 %v1899_v4  ;;  %v4455_v32 = vld [vmem:[%s5115_s4 + $0x338] sm:$0xff]  ;;  %v4465_v4 = vld [vmem:[%s5115_s4 + $0x2e8] sm:$0xff]  ;;  %v1909_v60 = vmul.f32 1.442695, %v1881_v15 }
 0x34c   : > { %5139 = vst [vmem:[#allocation33_spill] sm:$0xff] %v4444_v58  ;;  %5140 = vst [vmem:[#allocation34_spill] sm:$0xff] %v4455_v32  ;;  %v1911_v51 = vmul.f32 1.442695, %v1882_v41  ;;  %v1913_v43 = vmul.f32 1.442695, %v1883_v2  ;;  %3564 = vpow2.f32 %v1901_v12 }
 0x34d   : > { %5142 = vst [vmem:[#allocation36_spill] sm:$0xff] %v4465_v4  ;;  %v1915_v55 = vmul.f32 1.442695, %v1884_v53  ;;  %5143 = vst [vmem:[#allocation37_spill] sm:$0xff] %v4481_v10  ;;  %3566 = vpow2.f32 %v1903_v9  ;;  %v4496_v57 = vld [vmem:[%s5115_s4 + $0x3c0] sm:$0xff]  ;;  %v4501_v9 = vld [vmem:[%s5115_s4 + $0x3c8] sm:$0xff] }
 0x34e   : > { %v4446_v59 = vpop.eup %3548  ;;  %5144 = vst [vmem:[#allocation38_spill] sm:$0xff] %v4496_v57  ;;  %5145 = vst [vmem:[#allocation39_spill] sm:$0xff] %v4501_v9  ;;  %v4514_v56 = vld [vmem:[%s5115_s4 + $0x260] sm:$0xff]  ;;  %v4519_v13 = vld [vmem:[%s5115_s4 + $0x268] sm:$0xff]  ;;  %3568 = vpow2.f32 %v1905_v6 }
 0x34f   : > { %v4467_v5 = vpop.eup %3550  ;;  %v1945_v14 = vmul.f32 0.0, %v4446_v59  ;;  %5146 = vst [vmem:[#allocation40_spill] sm:$0xff] %v4514_v56  ;;  %5147 = vst [vmem:[#allocation41_spill] sm:$0xff] %v4519_v13  ;;  %v4532_v58 = vld [vmem:[%s5115_s4 + $0x2f0] sm:$0xff]  ;;  %v4537_v32 = vld [vmem:[%s5115_s4 + $0x2f8] sm:$0xff]  ;;  %3570 = vpow2.f32 %v1907_v61 }
 0x350   : > { %v4471_v52 = vpop.eup %3552  ;;  %5148 = vst [vmem:[#allocation42_spill] sm:$0xff] %v4532_v58  ;;  %5149 = vst [vmem:[#allocation43_spill] sm:$0xff] %v4537_v32  ;;  %3572 = vpow2.f32 %v1909_v60 }
 0x351   : > { %v4477_v17 = vpop.eup %3554  ;;  %v1949_v15 = vmul.f32 0.0, %v4471_v52  ;;  %3574 = vpow2.f32 %v1911_v51 }
 0x352   : > { %v1950_v33 = vmul.f32 0.0, %v4477_v17  ;;  %v4539_v31 = vpop.eup %3556  ;;  %3576 = vpow2.f32 %v1913_v43 }
 0x353   : > { %v4547_v18 = vpop.eup %3558  ;;  %v1947_v40 = vmul.f32 0.0, %v4539_v31  ;;  %3578 = vpow2.f32 %v1915_v55 }
 0x354   : > { %v1948_v56 = vmul.f32 0.0, %v4547_v18 }
 0x379   : > { %v1261_v41 = vpop.f32.mrb[12].mxu1  ;;  %v1415_v2 = vpop.f32.mrb[8].mxu0 }
 0x37a   : > { %v4504_v12 = vmul.f32 %v4475_v34, %v1261_v41  ;;  %v4508_v50 = vmul.f32 %v4475_v34, %v1415_v2  ;;  %v1263_v54 = vpop.f32.mrb[13].mxu1  ;;  %v1417_v53 = vpop.f32.mrb[9].mxu0  ;;  %v1946_v2 = vmul.f32 0.0, %v4467_v5 }
 0x37b   : > { %v4522_v41 = vmul.f32 %v4475_v34, %v1263_v54  ;;  %v4526_v11 = vmul.f32 %v4475_v34, %v1417_v53 }
 0x37c   : > { %v1953_v54 = vadd.f32 %v1945_v14, %v4504_v12  ;;  %v4543_v53 = vadd.f32 %v1949_v15, %v4508_v50  ;;  %v4555_v14 = vpop.eup %3560 }
 0x37d   : > { %v1954_v19 = vadd.f32 %v1946_v2, %v4522_v41  ;;  %v4551_v7 = vadd.f32 %v1950_v33, %v4526_v11  ;;  %v1267_v4 = vpop.f32.mrb[14].mxu1  ;;  %v1421_v42 = vpop.f32.mrb[10].mxu0  ;;  %v1951_v51 = vmul.f32 0.0, %v4555_v14 }
 0x37e   : > { %v1969_v15 = vrot.slane %v1953_v54, 6  ;;  %v1973_v48 = vrot.slane %v4543_v53, 6  ;;  %v1269_v3 = vpop.f32.mrb[15].mxu1  ;;  %v1423_v57 = vpop.f32.mrb[11].mxu0  ;;  %v4583_v62 = vmul.f32 %v4481_v10, %v1267_v4  ;;  %v4593_v44 = vmul.f32 %v4481_v10, %v1421_v42 }
 0x37f   : > { %v4560_v2 = vpop.eup %3562  ;;  %v1970_v33 = vrot.slane %v1954_v19, 6  ;;  %v1974_v9 = vrot.slane %v4551_v7, 6 }
 0x380   : > { %v1985_v6 = vmul.f32 %v4446_v59, %v1969_v15  ;;  %v1989_v60 = vmul.f32 %v4471_v52, %v1973_v48  ;;  %v4570_v32 = vpop.eup %3564  ;;  %v1952_v37 = vmul.f32 0.0, %v4560_v2 }
 0x381   : > { %v1986_v13 = vmul.f32 %v4467_v5, %v1970_v33  ;;  %v1990_v61 = vmul.f32 %v4477_v17, %v1974_v9  ;;  %v1338_v58 = vpop.f32.mrb[16].mxu1  ;;  %v4578_v55 = vpop.eup %3566 }
 0x382   : > { %v1993_v8 = vadd.f32 %v1985_v6, %v4504_v12  ;;  %v1997_v43 = vadd.f32 %v1989_v60, %v4508_v50  ;;  %v4575_v15 = vmul.f32 %v4475_v34, %v1338_v58  ;;  %v1340_v48 = vpop.f32.mrb[17].mxu1  ;;  %v4599_v0 = vpop.eup %3568 }
 0x383   : > { %v1994_v33 = vadd.f32 %v1986_v13, %v4522_v41  ;;  %v1998_v9 = vadd.f32 %v1990_v61, %v4526_v11  ;;  %v4586_v23 = vmul.f32 %v4475_v34, %v1340_v48  ;;  %v4602_v48 = vmul.f32 %v4481_v10, %v1269_v3  ;;  %v4607_v42 = vpop.eup %3570 }
 0x384   : > { %v2009_v6 = vrot.slane %v1993_v8, 6  ;;  %v2013_v60 = vrot.slane %v1997_v43, 6  ;;  %v4589_v58 = vadd.f32 %v1947_v40, %v4575_v15  ;;  %v2241_v27 = vsel %vm868_vm5, %v1953_v54, %v1993_v8  ;;  %5150 = vst [vmem:[#allocation44_spill] sm:$0xff] %v4607_v42  ;;  %v4614_v30 = vpop.eup %3572 }
 0x385   : > { %v2010_v38 = vrot.slane %v1994_v33, 6  ;;  %v4596_v13 = vadd.f32 %v1948_v56, %v4586_v23  ;;  %v1344_v61 = vpop.f32.mrb[18].mxu1  ;;  %v2242_v4 = vsel %vm868_vm5, %v1954_v19, %v1994_v33  ;;  %v2014_v29 = vrot.slane %v1998_v9, 6  ;;  %v4622_v63 = vpop.eup %3574 }
 0x386   : > { %v1971_v40 = vrot.slane %v4589_v58, 6  ;;  %v1346_v49 = vpop.f32.mrb[19].mxu1  ;;  %v2025_v8 = vmul.f32 %v4446_v59, %v2009_v6  ;;  %v2029_v54 = vmul.f32 %v4471_v52, %v2013_v60  ;;  %v4610_v56 = vmul.f32 %v4481_v10, %v1423_v57  ;;  %5152 = vst [vmem:[#allocation46_spill] sm:$0xff] %v4622_v63 }
 0x387   : > { %v1972_v19 = vrot.slane %v4596_v13, 6  ;;  %v2026_v33 = vmul.f32 %v4467_v5, %v2010_v38  ;;  %v4618_v1 = vmul.f32 %v4481_v10, %v1344_v61  ;;  %v4631_v61 = vpop.eup %3576 }
 0x388   : > { %5151 = vst [vmem:[#allocation45_spill] sm:$0xff] %v4610_v56  ;;  %v1987_v3 = vmul.f32 %v4539_v31, %v1971_v40  ;;  %v2033_v6 = vadd.f32 %v2025_v8, %v4504_v12  ;;  %v2037_v60 = vadd.f32 %v2029_v54, %v4508_v50  ;;  %v4626_v56 = vmul.f32 %v4481_v10, %v1346_v49  ;;  %v4638_v10 = vpop.eup %3578 }
 0x389   : > { %v1988_v57 = vmul.f32 %v4547_v18, %v1972_v19  ;;  %v1575_v42 = vpop.f32.mrb[12].mxu0  ;;  %v1492_v38 = vpop.f32.mrb[20].mxu1  ;;  %v2034_v46 = vadd.f32 %v2026_v33, %v4522_v41  ;;  %v2245_v40 = vsel %vm868_vm5, %v4543_v53, %v1997_v43  ;;  %5154 = vst [vmem:[#allocation48_spill] sm:$0xff] %v4631_v61  ;;  %5155 = vst [vmem:[#allocation49_spill] sm:$0xff] %v4638_v10 }
 0x38a   : > { %5153 = vst [vmem:[#allocation47_spill] sm:$0xff] %v4626_v56  ;;  %v1995_v8 = vadd.f32 %v1987_v3, %v4575_v15  ;;  %v2049_v47 = vrot.slane %v2033_v6, 6  ;;  %v2249_v54 = vsel %vm853_vm4, %v2241_v27, %v2033_v6  ;;  %v4636_v63 = vmul.f32 %v4475_v34, %v1492_v38  ;;  %v1577_v19 = vpop.f32.mrb[13].mxu0  ;;  %v1494_v49 = vpop.f32.mrb[21].mxu1 }
 0x38b   : > { %v4641_v56 = vadd.f32 %v1988_v57, %v4586_v23  ;;  %v2050_v33 = vrot.slane %v2034_v46, 6  ;;  %v2250_v53 = vsel %vm853_vm4, %v2242_v4, %v2034_v46  ;;  %v4645_v43 = vmul.f32 %v4475_v34, %v1494_v49 }
 0x38c   : > { %v2011_v3 = vrot.slane %v1995_v8, 6  ;;  %v2065_v61 = vmul.f32 %v4446_v59, %v2049_v47  ;;  %v4649_v27 = vadd.f32 %v1951_v51, %v4636_v63  ;;  %v2053_v6 = vrot.slane %v2037_v60, 6 }
 0x38d   : > { %v2066_v38 = vmul.f32 %v4467_v5, %v2050_v33  ;;  %v4653_v10 = vadd.f32 %v1952_v37, %v4645_v43  ;;  %v4655_v57 = vpop.f32.mrb[14].mxu0  ;;  %v4657_v35 = vpop.f32.mrb[22].mxu1  ;;  %v2030_v46 = vmul.f32 %v4477_v17, %v2014_v29  ;;  %v2246_v34 = vsel %vm868_vm5, %v4551_v7, %v1998_v9 }
 0x38e   : > { %5156 = vst [vmem:[#allocation50_spill] sm:$0xff] %v4655_v57  ;;  %5157 = vst [vmem:[#allocation51_spill] sm:$0xff] %v4657_v35  ;;  %v2012_v47 = vrot.slane %v4641_v56, 6  ;;  %v2073_v59 = vadd.f32 %v2065_v61, %v4504_v12  ;;  %v1975_v51 = vrot.slane %v4649_v27, 6  ;;  %v4665_v4 = vpop.f32.mrb[15].mxu0  ;;  %v4667_v5 = vpop.f32.mrb[23].mxu1  ;;  %v2069_v37 = vmul.f32 %v4471_v52, %v2053_v6 }
 0x38f   : > { %5158 = vst [vmem:[#allocation52_spill] sm:$0xff] %v4665_v4  ;;  %5159 = vst [vmem:[#allocation53_spill] sm:$0xff] %v4667_v5  ;;  %v2074_v49 = vadd.f32 %v2066_v38, %v4522_v41  ;;  %v1976_v33 = vrot.slane %v4653_v10, 6  ;;  %v2253_v29 = vsel %vm853_vm4, %v2245_v40, %v2037_v60  ;;  %v2027_v7 = vmul.f32 %v4539_v31, %v2011_v3 }
 0x390   : > { %v2089_v9 = vrot.slane %v2073_v59, 6  ;;  %v2257_v35 = vsel %vm838_vm3, %v2249_v54, %v2073_v59  ;;  %v1991_v12 = vmul.f32 %v4555_v14, %v1975_v51  ;;  %v2077_v61 = vadd.f32 %v2069_v37, %v4508_v50 }
 0x391   : > { %v2289_v4 = vmul.f32 %v2257_v35, %v1575_v42  ;;  %v2090_v57 = vrot.slane %v2074_v49, 6  ;;  %v2258_v5 = vsel %vm838_vm3, %v2250_v53, %v2074_v49  ;;  %v1992_v52 = vmul.f32 %v4560_v2, %v1976_v33  ;;  %v1729_v41 = vpop.f32.mrb[16].mxu0  ;;  %v1652_v6 = vpop.f32.mrb[24].mxu1 }
 0x392   : > { %v2105_v38 = vmul.f32 %v4570_v32, %v2089_v9  ;;  %v4681_v60 = vadd.f32 %v1991_v12, %v4636_v63  ;;  %v2290_v40 = vmul.f32 %v2258_v5, %v1577_v19  ;;  %v2093_v3 = vrot.slane %v2077_v61, 6  ;;  %v4683_v54 = vpop.f32.mrb[17].mxu0  ;;  %v4685_v59 = vpop.f32.mrb[25].mxu1 }
 0x393   : > { %v2106_v35 = vmul.f32 %v4578_v55, %v2090_v57  ;;  %v4689_v50 = vadd.f32 %v1992_v52, %v4645_v43  ;;  %v2261_v42 = vsel %vm838_vm3, %v2253_v29, %v2077_v61  ;;  %v2035_v53 = vadd.f32 %v2027_v7, %v4575_v15 }
 0x394   : > { %v2015_v51 = vrot.slane %v4681_v60, 6  ;;  %v2113_v37 = vadd.f32 %v2105_v38, %v4583_v62  ;;  %v2109_v19 = vmul.f32 %v4614_v30, %v2093_v3  ;;  %v4696_v5 = vmul.f32 %v2261_v42, %v1729_v41  ;;  %2506 = vmatprep.mubr.f32.mxu0 %v2290_v40 }
 0x395   : > { %v2016_v49 = vrot.slane %v4689_v50, 6  ;;  %v2114_v57 = vadd.f32 %v2106_v35, %v4602_v48  ;;  %v2051_v33 = vrot.slane %v2035_v53, 6  ;;  %v2243_v9 = vsel %vm868_vm5, %v4589_v58, %v1995_v8  ;;  %v4702_v29 = vpop.f32.mrb[18].mxu0  ;;  %v4704_v7 = vpop.f32.mrb[26].mxu1  ;;  %2507 = vmatmul.mubr.f32.vlgmr.msra.gmra.mrb[20].mxu0 %v2289_v4 }
 0x396   : > { %v2129_v12 = vrot.slane %v2113_v37, 6  ;;  %v2251_v61 = vsel %vm853_vm4, %v2243_v9, %v2035_v53  ;;  %v2038_v52 = vadd.f32 %v2030_v46, %v4526_v11  ;;  %v2028_v41 = vmul.f32 %v4547_v18, %v2012_v47  ;;  %v4709_v38 = vpop.f32.mrb[19].mxu0  ;;  %v4714_v3 = vpop.f32.mrb[27].mxu1 }
 0x397   : > { %v5160_v40 = vpack.c.bf16 %v4248_v45, %v4243_v16  ;;  %v2130_v58 = vrot.slane %v2114_v57, 6  ;;  %v2067_v8 = vmul.f32 %v4539_v31, %v2051_v33  ;;  %v2244_v4 = vsel %vm868_vm5, %v4596_v13, %v4641_v56 }
 0x398   : > { %v2117_v35 = vadd.f32 %v2109_v19, %v4593_v44  ;;  %v5161_v46 = vpack.c.bf16 %v4258_v20, %v4253_v39  ;;  %v2145_v47 = vmul.f32 %v4570_v32, %v2129_v12  ;;  %v2054_v42 = vrot.slane %v2038_v52, 6 }
 0x399   : > { %3427 = vmatpush3.bf16.msra.mxu0 %v5160_v40  ;;  %v2254_v16 = vsel %vm853_vm4, %v2246_v34, %v2038_v52  ;;  %v2036_v45 = vadd.f32 %v2028_v41, %v4586_v23  ;;  %v2146_v53 = vmul.f32 %v4578_v55, %v2130_v58  ;;  %v2075_v31 = vadd.f32 %v2067_v8, %v4575_v15  ;;  %v4729_v9 = vpop.f32.mrb[28].mxu1 }
 0x39a   : > { %3429 = vmatprep.subr.bf16.mxu0 %v5161_v46  ;;  %v2133_v33 = vrot.slane %v2117_v35, 6  ;;  %v2031_v13 = vmul.f32 %v4555_v14, %v2015_v51  ;;  %v2153_v56 = vadd.f32 %v2145_v47, %v4583_v62  ;;  %v2070_v39 = vmul.f32 %v4477_v17, %v2054_v42  ;;  %v4738_v12 = vpop.f32.mrb[29].mxu1 }
 0x39b   : > { %v2052_v20 = vrot.slane %v2036_v45, 6  ;;  %v2252_v19 = vsel %vm853_vm4, %v2244_v4, %v2036_v45  ;;  %v5162_v34 = vpack.c.bf16 %v4268_v22, %v4263_v21  ;;  %v2154_v15 = vadd.f32 %v2146_v53, %v4602_v48 }
 0x39c   : > { %v2091_v52 = vrot.slane %v2075_v31, 6  ;;  %v2259_v41 = vsel %vm838_vm3, %v2251_v61, %v2075_v31  ;;  %v2149_v51 = vmul.f32 %v4614_v30, %v2133_v33  ;;  %v5163_v40 = vpack.c.bf16 %v4278_v25, %v4273_v24  ;;  %v5165_v31 = vld [vmem:[#allocation12_spill] sm:$0xff] }
 0x39d   : > { %3431 = vmatpush3.bf16.msra.mxu0 %v5162_v34  ;;  %v2169_v17 = vrot.slane %v2153_v56, 6  ;;  %v2265_v58 = vsel %vm868_vm5, %v2113_v37, %v2153_v56  ;;  %v2291_v8 = vmul.f32 %v2259_v41, %v1652_v6  ;;  %v2078_v21 = vadd.f32 %v2070_v39, %v4526_v11  ;;  %v4751_v61 = vpop.f32.mrb[30].mxu1  ;;  %v5167_v56 = vld [vmem:[#allocation46_spill] sm:$0xff] }
 0x39e   : > { %3433 = vmatprep.subr.bf16.mxu0 %v5163_v40  ;;  %v2170_v22 = vrot.slane %v2154_v15, 6  ;;  %v2266_v4 = vsel %vm868_vm5, %v2114_v57, %v2154_v15  ;;  %v2107_v46 = vmul.f32 %v4599_v0, %v2091_v52  ;;  %v2068_v47 = vmul.f32 %v4547_v18, %v2052_v20  ;;  %v4759_v11 = vpop.f32.mrb[31].mxu1  ;;  %v5169_v40 = vld [vmem:[#allocation15_spill] sm:$0xff] }
 0x39f   : > { %v2185_v42 = vmul.f32 %v4570_v32, %v2169_v17  ;;  %v2094_v45 = vrot.slane %v2078_v21, 6  ;;  %v2262_v24 = vsel %vm838_vm3, %v2254_v16, %v2078_v21  ;;  %v2157_v25 = vadd.f32 %v2149_v51, %v4593_v44  ;;  %v5168_v51 = vld [vmem:[#allocation16_spill] sm:$0xff] }
 0x3a0   : > { %v5164_v6 = vpack.c.bf16 %v4289_v28, %v4283_v26  ;;  %v2186_v37 = vmul.f32 %v4578_v55, %v2170_v22  ;;  %v4763_v57 = vmul.f32 %v2262_v24, %v4683_v54  ;;  %v2076_v18 = vadd.f32 %v2068_v47, %v4586_v23  ;;  %v5171_v22 = vld [vmem:[#allocation44_spill] sm:$0xff]  ;;  %v5175_v24 = vld [vmem:[#allocation45_spill] sm:$0xff] }
 0x3a1   : > { %v2115_v53 = vadd.f32 %v2107_v46, %v4618_v1  ;;  %v5166_v16 = vpack.c.bf16 %v4312_v36, %v5165_v31  ;;  %v2193_v33 = vadd.f32 %v2185_v42, %v4583_v62  ;;  %v2110_v26 = vmul.f32 %v5167_v56, %v2094_v45  ;;  %v5173_v42 = vld [vmem:[#allocation19_spill] sm:$0xff] }
 0x3a2   : > { %3435 = vmatpush3.bf16.msra.mxu0 %v5164_v6  ;;  %v2173_v28 = vrot.slane %v2157_v25, 6  ;;  %v2269_v39 = vsel %vm868_vm5, %v2117_v35, %v2157_v25  ;;  %v2194_v20 = vadd.f32 %v2186_v37, %v4602_v48  ;;  %v2092_v34 = vrot.slane %v2076_v18, 6 }
 0x3a3   : > { %3437 = vmatprep.subr.bf16.mxu0 %v5166_v16  ;;  %v2260_v54 = vsel %vm838_vm3, %v2252_v19, %v2076_v18  ;;  %v2131_v15 = vrot.slane %v2115_v53, 6  ;;  %v2209_v23 = vrot.slane %v2193_v33, 6  ;;  %v2273_v52 = vsel %vm853_vm4, %v2265_v58, %v2193_v33  ;;  %v5172_v19 = vld [vmem:[#allocation20_spill] sm:$0xff]  ;;  %v5176_v18 = vld [vmem:[#allocation47_spill] sm:$0xff] }
 0x3a4   : > { %v2292_v41 = vmul.f32 %v2260_v54, %v4685_v59  ;;  %v2189_v36 = vmul.f32 %v4614_v30, %v2173_v28  ;;  %v5170_v17 = vpack.c.bf16 %v5168_v51, %v5169_v40  ;;  %v2210_v21 = vrot.slane %v2194_v20, 6  ;;  %v5181_v54 = vld [vmem:[#allocation23_spill] sm:$0xff] }
 0x3a5   : > { %v2274_v35 = vsel %vm853_vm4, %v2266_v4, %v2194_v20  ;;  %v2108_v46 = vmul.f32 %v5171_v22, %v2092_v34  ;;  %v2147_v47 = vmul.f32 %v4599_v0, %v2131_v15  ;;  %v5174_v45 = vpack.c.bf16 %v5172_v19, %v5173_v42  ;;  %v5177_v20 = vld [vmem:[#allocation11_spill] sm:$0xff] }
 0x3a6   : > { %3439 = vmatpush3.bf16.msra.mxu0 %v5170_v17  ;;  %v2225_v58 = vmul.f32 %v4570_v32, %v2209_v23  ;;  %v2197_v59 = vadd.f32 %v2189_v36, %v4593_v44  ;;  %v2118_v25 = vadd.f32 %v2110_v26, %v5175_v24  ;;  %v2039_v6 = vadd.f32 %v2031_v13, %v4636_v63  ;;  %v5178_v13 = vld [vmem:[#allocation10_spill] sm:$0xff]  ;;  %v5187_v51 = vld [vmem:[#allocation27_spill] sm:$0xff] }
 0x3a7   : > { %3441 = vmatprep.subr.bf16.mxu0 %v5174_v45  ;;  %2581 = vmatprep.mubr.f32.mxu1 %v2292_v41  ;;  %v2226_v37 = vmul.f32 %v4578_v55, %v2210_v21  ;;  %v2155_v4 = vadd.f32 %v2147_v47, %v4618_v1  ;;  %v2116_v31 = vadd.f32 %v2108_v46, %v5176_v18  ;;  %v5180_v55 = vld [vmem:[#allocation24_spill] sm:$0xff] }
 0x3a8   : > { %v2247_v16 = vsel %vm868_vm5, %v4649_v27, %v4681_v60  ;;  %2582 = vmatmul.mubr.f32.vlgmr.msra.gmra.mrb[32].mxu1 %v2291_v8  ;;  %v2233_v32 = vadd.f32 %v2225_v58, %v4583_v62  ;;  %v2213_v33 = vrot.slane %v2197_v59, 6  ;;  %v2277_v28 = vsel %vm853_vm4, %v2269_v39, %v2197_v59  ;;  %v5183_v8 = vld [vmem:[#allocation14_spill] sm:$0xff]  ;;  %v5184_v62 = vld [vmem:[#allocation13_spill] sm:$0xff]  ;;  %v5186_v39 = vld [vmem:[#allocation28_spill] sm:$0xff] }
 0x3a9   : > { %v2134_v26 = vrot.slane %v2118_v25, 6  ;;  %v5179_v34 = vpack.c.bf16 %v5177_v20, %v5178_v13  ;;  %v5182_v15 = vpack.c.bf16 %v5180_v55, %v5181_v54  ;;  %v2234_v23 = vadd.f32 %v2226_v37, %v4602_v48  ;;  %v5189_v48 = vld [vmem:[#allocation50_spill] sm:$0xff]  ;;  %v5190_v58 = vld [vmem:[#allocation52_spill] sm:$0xff] }
 0x3aa   : > { %v2171_v41 = vrot.slane %v2155_v4, 6  ;;  %v2267_v27 = vsel %vm868_vm5, %v2115_v53, %v2155_v4  ;;  %v2132_v60 = vrot.slane %v2116_v31, 6  ;;  %v5185_v36 = vpack.c.bf16 %v5183_v8, %v5184_v62 }
 0x3ab   : > { %3459 = vmatpush3.bf16.msra.mxu1 %v5179_v34  ;;  %3443 = vmatpush3.bf16.msra.mxu0 %v5182_v15  ;;  %v5188_v40 = vpack.c.bf16 %v5186_v39, %v5187_v51  ;;  %v2281_v17 = vsel %vm838_vm3, %v2273_v52, %v2233_v32  ;;  %v2229_v21 = vmul.f32 %v4614_v30, %v2213_v33  ;;  %v2055_v47 = vrot.slane %v2039_v6, 6  ;;  %v5191_v30 = vld [vmem:[#allocation18_spill] sm:$0xff]  ;;  %v5192_v32 = vld [vmem:[#allocation17_spill] sm:$0xff]  ;;  %v5201_v39 = vld [vmem:[#allocation35_spill] sm:$0xff] }
 0x3ac   : > { %3461 = vmatprep.subr.bf16.mxu1 %v5185_v36  ;;  %v2150_v46 = vmul.f32 %v5167_v56, %v2134_v26  ;;  %v2297_v19 = vmul.f32 %v2281_v17, %v5189_v48  ;;  %v2282_v53 = vsel %vm838_vm3, %v2274_v35, %v2234_v23  ;;  %v2187_v42 = vmul.f32 %v4599_v0, %v2171_v41  ;;  %v5194_v34 = vld [vmem:[#allocation22_spill] sm:$0xff]  ;;  %v5197_v41 = vld [vmem:[#allocation32_spill] sm:$0xff]  ;;  %v2410_v48 = vld [vmem:[%s5115_s4 + $0x348] sm:$0xff] }
 0x3ad   : > { %3445 = vmatprep.subr.bf16.mxu0 %v5188_v40  ;;  %v2148_v45 = vmul.f32 %v5171_v22, %v2132_v60  ;;  %v2298_v59 = vmul.f32 %v2282_v53, %v5190_v58  ;;  %v2237_v37 = vadd.f32 %v2229_v21, %v4593_v44  ;;  %v2071_v52 = vmul.f32 %v4555_v14, %v2055_v47  ;;  %v5195_v44 = vld [vmem:[#allocation21_spill] sm:$0xff]  ;;  %v5198_v60 = vld [vmem:[#allocation31_spill] sm:$0xff]  ;;  %v5200_v36 = vld [vmem:[#allocation36_spill] sm:$0xff] }
 0x3ae   : > { %v2158_v4 = vadd.f32 %v2150_v46, %v5175_v24  ;;  %v5193_v33 = vpack.c.bf16 %v5191_v30, %v5192_v32  ;;  %v2195_v26 = vadd.f32 %v2187_v42, %v4618_v1  ;;  %v2255_v20 = vsel %vm853_vm4, %v2247_v16, %v2039_v6  ;;  %v5203_v17 = vld [vmem:[#allocation26_spill] sm:$0xff]  ;;  %v5204_v21 = vld [vmem:[#allocation25_spill] sm:$0xff]  ;;  %v2409_v47 = vld [vmem:[%s5115_s4 + $0x340] sm:$0xff] }
 0x3af   : > { %v2156_v35 = vadd.f32 %v2148_v45, %v5176_v18  ;;  %v2032_v13 = vmul.f32 %v4560_v2, %v2016_v49  ;;  %v5196_v55 = vpack.c.bf16 %v5194_v34, %v5195_v44  ;;  %v2285_v14 = vsel %vm838_vm3, %v2277_v28, %v2237_v37  ;;  %2511 = vmatprep.mubr.f32.mxu0 %v2298_v59  ;;  %v5206_v45 = vld [vmem:[#allocation30_spill] sm:$0xff]  ;;  %v5207_v58 = vld [vmem:[#allocation29_spill] sm:$0xff]  ;;  %v5211_v30 = vld [vmem:[#allocation48_spill] sm:$0xff] }
 0x3b0   : > { %3463 = vmatpush3.bf16.msra.mxu1 %v5193_v33  ;;  %v2174_v54 = vrot.slane %v2158_v4, 6  ;;  %v2270_v15 = vsel %vm868_vm5, %v2118_v25, %v2158_v4  ;;  %v2079_v23 = vadd.f32 %v2071_v52, %v4636_v63  ;;  %v5199_v8 = vpack.c.bf16 %v5197_v41, %v5198_v60  ;;  %2512 = vmatmul.mubr.f32.gmra.mrb[22].mxu0 %v2297_v19  ;;  %v2383_v63 = vld [vmem:[%s5115_s4 + $0x270] sm:$0xff]  ;;  %v2384_v25 = vld [vmem:[%s5115_s4 + $0x278] sm:$0xff]  ;;  %v5210_v4 = vld [vmem:[#allocation37_spill] sm:$0xff] }
 0x3b1   : > { %3465 = vmatprep.subr.bf16.mxu1 %v5196_v55  ;;  %v4843_v6 = vmul.f32 %v2285_v14, %v4702_v29  ;;  %v2211_v49 = vrot.slane %v2195_v26, 6  ;;  %v2275_v16 = vsel %vm853_vm4, %v2267_v27, %v2195_v26  ;;  %v2172_v62 = vrot.slane %v2156_v35, 6  ;;  %2656 = vmatprep.mubr.f32.mxu0 %v4763_v57  ;;  %v2427_v37 = vld [vmem:[%s5115_s4 + $0x3d0] sm:$0xff]  ;;  %v2428_v57 = vld [vmem:[%s5115_s4 + $0x3d8] sm:$0xff]  ;;  %v5212_v33 = vld [vmem:[#allocation41_spill] sm:$0xff] }
 0x3b2   : > { %3447 = vmatpush3.bf16.msra.mxu0 %v5199_v8  ;;  %v5202_v28 = vpack.c.bf16 %v5200_v36, %v5201_v39  ;;  %v2190_v29 = vmul.f32 %v5167_v56, %v2174_v54  ;;  %v2268_v51 = vsel %vm868_vm5, %v2116_v31, %v2156_v35  ;;  %v2095_v40 = vrot.slane %v2079_v23, 6  ;;  %v5213_v26 = vld [vmem:[#allocation40_spill] sm:$0xff]  ;;  %v5215_v14 = vld [vmem:[#allocation43_spill] sm:$0xff]  ;;  %v5216_v54 = vld [vmem:[#allocation42_spill] sm:$0xff] }
 0x3b3   : > { %v2263_v27 = vsel %vm838_vm3, %v2255_v20, %v2079_v23  ;;  %v5205_v46 = vpack.c.bf16 %v5203_v17, %v5204_v21  ;;  %v2227_v19 = vmul.f32 %v4599_v0, %v2211_v49  ;;  %v2188_v31 = vmul.f32 %v5171_v22, %v2172_v62  ;;  %v5209_v0 = vld [vmem:[#allocation51_spill] sm:$0xff]  ;;  %v5218_v49 = vld [vmem:[#allocation34_spill] sm:$0xff]  ;;  %v5219_v62 = vld [vmem:[#allocation33_spill] sm:$0xff] }
 0x3b4   : > { %3449 = vmatprep.subr.bf16.mxu0 %v5202_v28  ;;  %v4871_v53 = vmul.f32 %v2263_v27, %v4729_v9  ;;  %v2040_v42 = vadd.f32 %v2032_v13, %v4645_v43  ;;  %v5208_v59 = vpack.c.bf16 %v5206_v45, %v5207_v58  ;;  %v4885_v52 = vmul.f32 %v5210_v4, %v5209_v0  ;;  %v2412_v17 = vld [vmem:[%s5115_s4 + $0x358] sm:$0xff]  ;;  %v5225_v0 = vld [vmem:[#allocation53_spill] sm:$0xff] }
 0x3b5   : > { %3467 = vmatpush3.bf16.msra.mxu1 %v5205_v46  ;;  %v2198_v9 = vadd.f32 %v2190_v29, %v5175_v24  ;;  %v2111_v32 = vmul.f32 %v5211_v30, %v2095_v40  ;;  %v5214_v35 = vpack.c.bf16 %v5212_v33, %v5213_v26  ;;  %v3454_v20 = vpack.c.bf16 %v2384_v25, %v2383_v63  ;;  %v5221_v29 = vld [vmem:[#allocation39_spill] sm:$0xff]  ;;  %v5222_v40 = vld [vmem:[#allocation38_spill] sm:$0xff]  ;;  %v5226_v26 = vld [vmem:[#allocation49_spill] sm:$0xff] }
 0x3b6   : > { %3469 = vmatprep.subr.bf16.mxu1 %v5208_v59  ;;  %v2235_v13 = vadd.f32 %v2227_v19, %v4618_v1  ;;  %v2196_v34 = vadd.f32 %v2188_v31, %v5176_v18  ;;  %v2056_v44 = vrot.slane %v2040_v42, 6  ;;  %v3474_v55 = vpack.c.bf16 %v2410_v48, %v2409_v47 }
 0x3b7   : > { %3451 = vmatpush3.bf16.msra.mxu0 %v5214_v35  ;;  %v5217_v23 = vpack.c.bf16 %v5215_v14, %v5216_v54  ;;  %v2214_v41 = vrot.slane %v2198_v9, 6  ;;  %v2278_v60 = vsel %vm853_vm4, %v2270_v15, %v2198_v9  ;;  %v2119_v8 = vadd.f32 %v2111_v32, %v4885_v52  ;;  %v2411_v15 = vld [vmem:[%s5115_s4 + $0x350] sm:$0xff] }
 0x3b8   : > { %v5220_v36 = vpack.c.bf16 %v5218_v49, %v5219_v62  ;;  %v3476_v39 = vpack.c.bf16 %v2428_v57, %v2427_v37  ;;  %v2283_v1 = vsel %vm838_vm3, %v2275_v16, %v2235_v13  ;;  %v2212_v28 = vrot.slane %v2196_v34, 6  ;;  %v2431_v57 = vld [vmem:[%s5115_s4 + $0x3f0] sm:$0xff] }
 0x3b9   : > { %3453 = vmatprep.subr.bf16.mxu0 %v5217_v23  ;;  %v2276_v63 = vsel %vm853_vm4, %v2268_v51, %v2196_v34  ;;  %v2072_v25 = vmul.f32 %v4560_v2, %v2056_v44  ;;  %v5223_v27 = vpack.c.bf16 %v5221_v29, %v5222_v40  ;;  %v2299_v21 = vmul.f32 %v2283_v1, %v4704_v7  ;;  %v2429_v2 = vld [vmem:[%s5115_s4 + $0x3e0] sm:$0xff]  ;;  %v2430_v51 = vld [vmem:[%s5115_s4 + $0x3e8] sm:$0xff] }
 0x3ba   : > { %3471 = vmatpush3.bf16.msra.mxu1 %v5220_v36  ;;  %v2230_v16 = vmul.f32 %v5167_v56, %v2214_v41  ;;  %v2135_v46 = vrot.slane %v2119_v8, 6  ;;  %v2228_v47 = vmul.f32 %v5171_v22, %v2212_v28  ;;  %v2248_v7 = vsel %vm868_vm5, %v4653_v10, %v4689_v50  ;;  %v2413_v10 = vld [vmem:[%s5115_s4 + $0x360] sm:$0xff]  ;;  %v2414_v50 = vld [vmem:[%s5115_s4 + $0x368] sm:$0xff] }
 0x3bb   : > { %3473 = vmatprep.subr.bf16.mxu1 %v5223_v27  ;;  %3455 = vmatpush3.bf16.msra.mxu0 %v3454_v20  ;;  %v2080_v48 = vadd.f32 %v2072_v25, %v4645_v43  ;;  %v5224_v19 = vmov 0.0   ;;  %v2256_v31 = vsel %vm853_vm4, %v2248_v7, %v2040_v42  ;;  %v3478_v58 = vpack.c.bf16 %v2412_v17, %v2411_v15  ;;  %v3526_v17 = vld [vmem:[%s3786_s3 + $0x10] sm:$0xff]  }
 0x3bc   : > { %3316 = vmatprep.subr.bf16.mxu0 %v5224_v19  ;;  %v2238_v56 = vadd.f32 %v2230_v16, %v5175_v24  ;;  %v2151_v45 = vmul.f32 %v5211_v30, %v2135_v46  ;;  %v2236_v59 = vadd.f32 %v2228_v47, %v5176_v18  ;;  %v3480_v43 = vpack.c.bf16 %v2430_v51, %v2429_v2  ;;  %v3068_v2 = vld [vmem:[%s665_s13] ss:$0 sm:$0xff]  ;;  %s2845_s13 = sshll.u32 %s3631_s20, 4  ;;  %s2846_s13 = int_to_ptr.vmem [resolvable:$true] %s2845_s13 }
 0x3bd   : > { %v2096_v37 = vrot.slane %v2080_v48, 6  ;;  %v2264_v22 = vsel %vm838_vm3, %v2256_v31, %v2080_v48  ;;  %v1944_v9 = vmul.f32 %v5210_v4, %v5225_v0  ;;  %v3482_v34 = vpack.c.bf16 %v2414_v50, %v2413_v10  ;;  %v2415_v4 = vld [vmem:[%s5115_s4 + $0x370] sm:$0xff]  ;;  %v5227_v51 = vld [vmem:[#allocation8_spill] sm:$0xff]  ;;  %v5229_v10 = vld [vmem:[#allocation7_spill] sm:$0xff]  ;;  %p3597_p9 = scmp.lt.s32.totalorder %s2846_s13, %s2846_s13 }
 0x3be   : > { %3475 = vmatpush3.bf16.msra.mxu1 %v3474_v55  ;;  %2657 = vmatmul.mubr.f32.vlgmr.msra.gmra.mrb[24].mxu0 %v4696_v5  ;;  %v2286_v24 = vsel %vm838_vm3, %v2278_v60, %v2238_v56  ;;  %v2296_v42 = vmul.f32 %v2264_v22, %v4738_v12  ;;  %v2159_v18 = vadd.f32 %v2151_v45, %v4885_v52  ;;  %v2432_v5 = vld [vmem:[%s5115_s4 + $0x3f8] sm:$0xff]  ;;  %v5228_v56 = vld [vmem:[#allocation6_spill] sm:$0xff]  ;;  %v3070_v50 = vmul.f32 -1.442695, %v5229_v10 }
 0x3bf   : > { %3477 = vmatprep.subr.bf16.mxu1 %v3476_v39  ;;  %v2302_v32 = vmul.f32 %v2286_v24, %v4709_v38  ;;  %v2284_v33 = vsel %vm838_vm3, %v2276_v63, %v2236_v59  ;;  %v2112_v35 = vmul.f32 %v5226_v26, %v2096_v37  ;;  %v3484_v55 = vpack.c.bf16 %v2432_v5, %v2431_v57  ;;  %v2416_v38 = vld [vmem:[%s5115_s4 + $0x378] sm:$0xff] }
 0x3c0   : > { %v2300_v12 = vmul.f32 %v2284_v33, %v4714_v3  ;;  %v2175_v20 = vrot.slane %v2159_v18, 6  ;;  %v2271_v13 = vsel %vm868_vm5, %v2119_v8, %v2159_v18  ;;  %v3486_v23 = vpack.c.bf16 %v2416_v38, %v2415_v4 }
 0x3c1   : > { %v2120_v44 = vadd.f32 %v2112_v35, %v1944_v9  ;;  %2661 = vmatprep.mubr.f32.mxu0 %v2302_v32  ;;  %v2440_v47 = vmul.f32 %v3068_v2, %v5227_v51  ;;  %v3069_v31 = vmul.f32 -1.442695, %v5228_v56 }
 0x3c2   : > { %3479 = vmatpush3.bf16.msra.mxu1 %v3478_v58  ;;  %v2191_v14 = vmul.f32 %v5211_v30, %v2175_v20  ;;  %2586 = vmatprep.mubr.f32.mxu1 %v2300_v12 }
 0x3c3   : > { %3481 = vmatprep.subr.bf16.mxu1 %v3480_v43  ;;  %2662 = vmatmul.mubr.f32.gmra.mrb[26].mxu0 %v4843_v6  ;;  %v2136_v3 = vrot.slane %v2120_v44, 6  ;;  %3580 = vpow2.f32 %v3069_v31 }
 0x3c4   : > { %2587 = vmatmul.mubr.f32.gmra.mrb[34].mxu1 %v2299_v21  ;;  %3324 = vmatprep.mubr.msk.bf16.mxu0 %vm3629_vm2, %v5224_v19  ;;  %v2199_v54 = vadd.f32 %v2191_v14, %v4885_v52  ;;  %v3527_v21 = vld [vmem:[%s3786_s3 + $0x18] sm:$0xff]   ;;  %3582 = vpow2.f32 %v3070_v50 }
 0x3c5   : > { %2731 = vmatprep.mubr.f32.mxu1 %v2296_v42  ;;  %v2152_v41 = vmul.f32 %v5226_v26, %v2136_v3 }
 0x3c6   : > { %3483 = vmatpush3.bf16.msra.mxu1 %v3482_v34  ;;  %v2215_v60 = vrot.slane %v2199_v54, 6  ;;  %v2279_v8 = vsel %vm853_vm4, %v2271_v13, %v2199_v54 }
 0x3c7   : > { %3485 = vmatprep.subr.bf16.mxu1 %v3484_v55  ;;  %v2160_v49 = vadd.f32 %v2152_v41, %v1944_v9 }
 0x3c8   : > { %v2231_v62 = vmul.f32 %v5211_v30, %v2215_v60 }
 0x3c9   : > { %v2176_v6 = vrot.slane %v2160_v49, 6  ;;  %v2272_v36 = vsel %vm868_vm5, %v2120_v44, %v2160_v49 }
 0x3ca   : > { %3487 = vmatpush3.bf16.msra.mxu1 %v3486_v23  ;;  %v2239_v39 = vadd.f32 %v2231_v62, %v4885_v52 }
 0x3cb   : > { %v2192_v1 = vmul.f32 %v5226_v26, %v2176_v6 }
 0x3cc   : > { %v2287_v28 = vsel %vm838_vm3, %v2279_v8, %v2239_v39 }
 0x3cd   : > { %2732 = vmatmul.mubr.f32.vlgmr.msra.gmra.mrb[36].mxu1 %v4871_v53  ;;  %v2303_v63 = vmul.f32 %v2287_v28, %v4751_v61  ;;  %v2200_v25 = vadd.f32 %v2192_v1, %v1944_v9  ;;  %v3524_v53 = vld [vmem:[%s3786_s3] sm:$0xff]   ;;  %v3525_v61 = vld [vmem:[%s3786_s3 + $0x8] sm:$0xff]   ;;  %v3581_v43 = vpop.eup %3580  ;;  %s3590_s3 = scalar_lea.vmem %s2846_s13, 256 }
 0x3ce   : > { %3317 = vmatpush3.bf16.msra.mxu0 %v3524_v53  ;;  %v2748_v42 = vadd.f32 1.0, %v3581_v43  ;;  %v3583_v44 = vpop.eup %3582  ;;  %p3591_p6 = scmp.ne.s32.totalorder %s2846_s13, %s3590_s3  ;;  %p3598_p10 = scmp.lt.s32.totalorder %s3590_s3, %s3590_s3 }
 0x3cf   : > { %v2216_v29 = vrot.slane %v2200_v25, 6  ;;  %v2280_v30 = vsel %vm853_vm4, %v2272_v36, %v2200_v25  ;;  %3318 = vmatprep.subr.bf16.mxu0 %v5224_v19  ;;  %v2749_v14 = vadd.f32 1.0, %v3583_v44  ;;  %v3588_v25 = vld [vmem:[#allocation2] sm:$0xff] }
 0x3d0   : > { %3584 = vrcp.f32 %v2748_v42  ;;  %p3592_p7 = pnand %p3591_p6, %p3492_p5  ;;  %p3599_p11 = por %p3598_p10, %p3597_p9 }
 0x3d1   : > { %v2232_v40 = vmul.f32 %v5226_v26, %v2216_v29  ;;  %3586 = vrcp.f32 %v2749_v14 }
 0x3d2   : > { %3319 = vmatpush3.bf16.msra.mxu0 %v3525_v61  ;;  %p3593_p8 = pneg %p3592_p7 }
 0x3d3   : > { %v2240_v27 = vadd.f32 %v2232_v40, %v1944_v9  ;;  %3320 = vmatprep.subr.bf16.mxu0 %v5224_v19  ;;  %v5230_v9 = vld [vmem:[#allocation9_spill] sm:$0xff] }
 0x3d4   : > { %v2441_v32 = vmul.f32 %v3068_v2, %v5230_v9  ;;  %p3600_p12 = pnand %p3599_p11, %p3593_p8 }
 0x3d5   : > { %v2288_v52 = vsel %vm838_vm3, %v2280_v30, %v2240_v27  ;;  %v3589_v27 = vld [vmem:[#allocation2 + $0x8] sm:$0xff] }
 0x3d6   : > { %v2304_v15 = vmul.f32 %v2288_v52, %v4759_v11  ;;  %3321 = vmatpush3.bf16.msra.mxu0 %v3526_v17 }
 0x3d7   : > { %3322 = vmatprep.subr.bf16.mxu0 %v5224_v19 }
 0x3d8   : > { %2736 = vmatprep.mubr.f32.mxu1 %v2304_v15 }
 0x3d9   : > { %2737 = vmatmul.mubr.f32.gmra.mrb[38].mxu1 %v2303_v63 }
 0x3da   : > { %3323 = vmatpush3.bf16.msra.mxu0 %v3527_v21  ;;  %v3585_v38 = vpop.eup %3584 }
 0x3db   : > { %v2754_v23 = vmul.f32 %v3585_v38, %v5228_v56  ;;  %v3587_v49 = vpop.eup %3586 }
 0x3dc   : > { %v2755_v36 = vmul.f32 %v3587_v49, %v5229_v10 }
 0x468   : > { %v3139_v16 = vpop.f32.mrb[20].mxu0 }
 0x469   : > { %v3140_v46 = vpop.f32.mrb[21].mxu0 }
 0x46a   : > { %v3141_v11 = vadd.f32 %v3140_v46, %v3139_v16 }
 0x46c   : > { %v2509_v45 = vadd.f32 %v3141_v11, %v2440_v47 }
 0x47b   : > { %v3177_v48 = vpop.f32.mrb[32].mxu1 }
 0x47c   : > { %v3178_v7 = vpop.f32.mrb[33].mxu1 }
 0x47d   : > { %v3179_v58 = vadd.f32 %v3178_v7, %v3177_v48 }
 0x47f   : > { %v2584_v59 = vadd.f32 %v3179_v58, %v2509_v45 }
 0x483   : > { %v3142_v19 = vpop.f32.mrb[22].mxu0 }
 0x484   : > { %v3143_v37 = vpop.f32.mrb[23].mxu0 }
 0x485   : > { %v3144_v22 = vadd.f32 %v3143_v37, %v3142_v19 }
 0x487   : > { %v2514_v20 = vadd.f32 %v3144_v22, %v2441_v32 }
 0x491   : > { %v3215_v24 = vpop.f32.mrb[24].mxu0 }
 0x492   : > { %v3216_v18 = vpop.f32.mrb[25].mxu0 }
 0x493   : > { %v3217_v57 = vadd.f32 %v3216_v18, %v3215_v24 }
 0x495   : > { %v2659_v5 = vadd.f32 %v3217_v57, %v2584_v59 }
 0x496   : > { %v3218_v0 = vpop.f32.mrb[26].mxu0 }
 0x497   : > { %v3180_v33 = vpop.f32.mrb[34].mxu1  ;;  %v3219_v26 = vpop.f32.mrb[27].mxu0 }
 0x498   : > { %v3181_v35 = vpop.f32.mrb[35].mxu1  ;;  %v3220_v12 = vadd.f32 %v3219_v26, %v3218_v0 }
 0x499   : > { %v3182_v13 = vadd.f32 %v3181_v35, %v3180_v33 }
 0x49b   : > { %v2589_v34 = vadd.f32 %v3182_v13, %v2514_v20 }
 0x49d   : > { %v2664_v55 = vadd.f32 %v3220_v12, %v2589_v34 }
 0x4a0   : > { %v3253_v4 = vpop.f32.mrb[36].mxu1 }
 0x4a1   : > { %v3254_v3 = vpop.f32.mrb[37].mxu1 }
 0x4a2   : > { %v3255_v54 = vadd.f32 %v3254_v3, %v3253_v4 }
 0x4a4   : > { %v2734_v41 = vadd.f32 %v3255_v54, %v2659_v5 }
 0x4a6   : > { %v2756_v60 = vmul.f32 %v2754_v23, %v2734_v41 }
 0x4ac   : > { %v3256_v8 = vpop.f32.mrb[38].mxu1 }
 0x4ad   : > { %v3257_v62 = vpop.f32.mrb[39].mxu1 }
 0x4ae   : > { %v3258_v6 = vadd.f32 %v3257_v62, %v3256_v8 }
 0x4b0   : > { %v2739_v39 = vadd.f32 %v3258_v6, %v2664_v55 }
 0x4b2   : > { %v2757_v1 = vmul.f32 %v2755_v36, %v2739_v39 }
 0x4b4   : > { %v2758_v28 = vpack.c.bf16 %v2757_v1, %v2756_v60 }
 0x4b6   : > { %3325 = vmatmul.mubr.msk.bf16.vlgmr.msra.gmra.mrb[28].mxu0 %vm945_vm6, %v2758_v28 }
 0x589   : > { %v2828_v63 = vpop.f32.mrb[28].mxu0 }
 0x58a   : > { %v2835_v29 = vadd.f32 %v3588_v25, %v2828_v63  ;;  %v3326_v30 = vpop.f32.mrb[29].mxu0 }
 0x58b   : > { %v2831_v40 = vpop.f32.mrb[30].mxu0 }
 0x58c   : > { %2837 = vst.msk [vmem:[#allocation2] sm:$0xff] %vm685_vm1, %v2835_v29  ;;  %v2836_v52 = vadd.f32 %v3589_v27, %v2831_v40  ;;  %v3327_v15 = vpop.f32.mrb[31].mxu0 }
 0x58e   : > { %2838 = vst.msk [vmem:[#allocation2 + $0x8] sm:$0xff] %vm685_vm1, %v2836_v52 }
 0x58f   : > { %3603 = shalt.err (!%p3600_p12)
}
 0x590   : > { %s5231_s23 = sld [smem:[#allocation60_spill]] }
 0x596   : > { %s3604_s26 = scalar_lea.hbm %s5231_s23, 256 }
 0x597   : > { %p3605_p13 = scmp.ne.s32.totalorder %s5231_s23, %s3604_s26  ;;  %p3610_p2 = scmp.lt.u32.totalorder %s3604_s26, %s5231_s23 }
 0x599   : > { %p3606_p0 = pnand %p3605_p13, %p3492_p5 }
 0x59b   : > { %p3607_p1 = pneg %p3606_p0 }
 0x59d   : > { %p3612_p3 = pnand %p3610_p2, %p3607_p1 }
 0x59f   : > { %3615 = shalt.err (!%p3612_p3)
}
 0x5a0   : > { %s3632_s21 = smov 128   ;;  %s3633_s6 = smov 8  }
 0x5a1   : > { %3489 = dma.vmem_to_hbm [thread:$0]  (%p3492_p5), %s2846_s13, 256, %s5231_s23, [#allocation3], %s3632_s21, %s3632_s21, %s3633_s6  }
 0x5a2   : > { %3621 = dma.done.wait (%p3492_p5), [#allocation3], 256  }
 0x5a3   : > { %3623 = vsyncadd (%p3492_p5), [#allocation3], 4294967040 }
 0x5a4 PF: > { %s5232_s30 = sld [smem:[#allocation5_spill]] }
 0x5aa   : > { %s26_s18 = sadd.s32 1, %s5232_s30  }
 0x5ab   : > { %p23_p4 = scmp.ge.s32.totalorder %s26_s18, 4  }
 0x5ad   :  { %25 = sbr.rel (!%p23_p4) target bundleno = 9 (0x9), region = 144 }
 0x5b4   :  { %2861 = vsyncpa [#allocation3], 1 }
 0x5b5   :  { %2863 = vsyncpa [#allocation3 + $0x1], 1 }

</bundles_post_ra>
